<compile_context>
chip_gen: v7x
topology: tpu7x:2x2x1
jax: 0.10.0
libtpu: 0.0.40
codegen_flags: <defaults>
</compile_context>

<pallas_src>
import functools

import jax
import jax.numpy as jnp
from jax.experimental import pallas as pl
from jax.experimental.pallas import tpu as pltpu

EPS = 1e-5  # config.norm_eps


def find_multiple(n: int, k: int) -> int:
    if n % k == 0:
        return n
    return n + k - n % k


def _tile(n: int, pref: int, align: int) -> int:
    """Largest tile <= pref that divides n and is align-aligned; else the full dim."""
    if n <= pref:
        return n
    d = (pref // align) * align
    while d >= align:
        if n % d == 0:
            return d
        d -= align
    return n  # full dim is always a legal block


# ----------------------------- RMSNorm kernel ------------------------------ #

def _rmsnorm_kernel(x_ref, w_ref, o_ref):
    x = x_ref[...].astype(jnp.float32)
    ms = jnp.mean(x * x, axis=-1, keepdims=True)
    y = x * jax.lax.rsqrt(ms + EPS) * w_ref[...].astype(jnp.float32)
    o_ref[...] = y.astype(o_ref.dtype)


def rmsnorm(x2d, weight, out_dtype=jnp.bfloat16):
    M, D = x2d.shape
    tm = _tile(M, 256, 8)
    return pl.pallas_call(
        _rmsnorm_kernel,
        out_shape=jax.ShapeDtypeStruct((M, D), out_dtype),
        grid=(M // tm,),
        in_specs=[pl.BlockSpec((tm, D), lambda i: (i, 0)),
                  pl.BlockSpec((1, D), lambda i: (0, 0))],
        out_specs=pl.BlockSpec((tm, D), lambda i: (i, 0)),
        compiler_params=pltpu.CompilerParams(dimension_semantics=("parallel",)),
    )(x2d, weight.reshape(1, D))


# ----------------------- tiled projection (MXU) kernels --------------------- #

def _matmul_kernel(x_ref, w_ref, o_ref, acc_ref):
    kk = pl.program_id(2)

    @pl.when(kk == 0)
    def _():
        acc_ref[...] = jnp.zeros_like(acc_ref)

    acc_ref[...] += jnp.dot(x_ref[...], w_ref[...],
                            preferred_element_type=jnp.float32)

    @pl.when(kk == pl.num_programs(2) - 1)
    def _():
        o_ref[...] = acc_ref[...].astype(o_ref.dtype)


def _matmul_res_kernel(x_ref, w_ref, res_ref, o_ref, acc_ref):
    kk = pl.program_id(2)

    @pl.when(kk == 0)
    def _():
        acc_ref[...] = jnp.zeros_like(acc_ref)

    acc_ref[...] += jnp.dot(x_ref[...], w_ref[...],
                            preferred_element_type=jnp.float32)

    @pl.when(kk == pl.num_programs(2) - 1)
    def _():
        o_ref[...] = (acc_ref[...] + res_ref[...].astype(jnp.float32)).astype(o_ref.dtype)


def linear(x2d, w_t, residual=None, out_dtype=jnp.float32,
           tm_pref=256, tn_pref=512, tk_pref=512):
    """y = x @ w_t (+ residual). x2d: (M, K) bf16, w_t: (K, N) bf16, residual: (M, N) f32."""
    M, K = x2d.shape
    K2, N = w_t.shape
    assert K == K2
    tm = _tile(M, tm_pref, 8)
    tn = _tile(N, tn_pref, 128)
    tk = _tile(K, tk_pref, 128)
    grid = (M // tm, N // tn, K // tk)

    in_specs = [pl.BlockSpec((tm, tk), lambda i, j, k: (i, k)),
                pl.BlockSpec((tk, tn), lambda i, j, k: (k, j))]
    args = [x2d, w_t]
    kernel = _matmul_kernel
    if residual is not None:
        in_specs.append(pl.BlockSpec((tm, tn), lambda i, j, k: (i, j)))
        args.append(residual)
        kernel = _matmul_res_kernel

    return pl.pallas_call(
        kernel,
        out_shape=jax.ShapeDtypeStruct((M, N), out_dtype),
        grid=grid,
        in_specs=in_specs,
        out_specs=pl.BlockSpec((tm, tn), lambda i, j, k: (i, j)),
        scratch_shapes=[pltpu.VMEM((tm, tn), jnp.float32)],
        compiler_params=pltpu.CompilerParams(
            dimension_semantics=("parallel", "parallel", "arbitrary")),
    )(*args)


# ---------------- fused FeedForward: silu(x@w1)*(x@w3) @ w2 + res ----------- #

def _ffn_kernel(x_ref, w1_ref, w3_ref, w2_ref, res_ref, o_ref, acc_ref):
    l = pl.program_id(1)

    @pl.when(l == 0)
    def _():
        acc_ref[...] = jnp.zeros_like(acc_ref)

    x = x_ref[...]
    h1 = jnp.dot(x, w1_ref[...], preferred_element_type=jnp.float32)
    h3 = jnp.dot(x, w3_ref[...], preferred_element_type=jnp.float32)
    g = (h1 * jax.nn.sigmoid(h1)) * h3                       # silu(h1) * h3 in f32
    acc_ref[...] += jnp.dot(g.astype(w2_ref.dtype), w2_ref[...],
                            preferred_element_type=jnp.float32)

    @pl.when(l == pl.num_programs(1) - 1)
    def _():
        o_ref[...] = (acc_ref[...] + res_ref[...].astype(jnp.float32)).astype(o_ref.dtype)


def ffn_fused(x2d, w1_t, w3_t, w2_t, residual, out_dtype=jnp.float32,
              tm_pref=256, ti_pref=512):
    M, D = x2d.shape
    D2, I = w1_t.shape
    assert D == D2 and w3_t.shape == (D, I) and w2_t.shape == (I, D)
    tm = _tile(M, tm_pref, 8)
    ti = _tile(I, ti_pref, 128)
    grid = (M // tm, I // ti)
    return pl.pallas_call(
        _ffn_kernel,
        out_shape=jax.ShapeDtypeStruct((M, D), out_dtype),
        grid=grid,
        in_specs=[pl.BlockSpec((tm, D), lambda i, l: (i, 0)),
                  pl.BlockSpec((D, ti), lambda i, l: (0, l)),
                  pl.BlockSpec((D, ti), lambda i, l: (0, l)),
                  pl.BlockSpec((ti, D), lambda i, l: (l, 0)),
                  pl.BlockSpec((tm, D), lambda i, l: (i, 0))],
        out_specs=pl.BlockSpec((tm, D), lambda i, l: (i, 0)),
        scratch_shapes=[pltpu.VMEM((tm, D), jnp.float32)],
        compiler_params=pltpu.CompilerParams(
            dimension_semantics=("parallel", "arbitrary")),
    )(x2d, w1_t, w3_t, w2_t, residual)


# ------------------------- attention core (per batch) ----------------------- #

def _attn_kernel(q_ref, k_ref, v_ref, o_ref, *, n_head, n_kv, head_dim, scale):
    S = q_ref.shape[1]
    rep = n_head // n_kv

    # Causal mask built in-kernel (no (S,S) f32 HBM input); hoisted out of the head loop.
    row = jax.lax.broadcasted_iota(jnp.int32, (S, S), 0)
    col = jax.lax.broadcasted_iota(jnp.int32, (S, S), 1)
    allow = col <= row
    neg = jnp.float32(jnp.finfo(jnp.float32).min)

    q = q_ref[0]                       # (S, n_head*hd)  bf16
    k = k_ref[0]                       # (S, n_kv*hd)    bf16
    v = v_ref[0]                       # (S, n_kv*hd)    bf16
    scale_b = jnp.asarray(scale, q.dtype)

    outs = []
    for h in range(n_head):            # static unroll; GQA: kv head = h // rep (no jnp.repeat)
        g = h // rep
        q_h = q[:, h * head_dim:(h + 1) * head_dim] * scale_b   # scale q, not the (S,S) scores
        k_h = k[:, g * head_dim:(g + 1) * head_dim]
        v_h = v[:, g * head_dim:(g + 1) * head_dim]
        s = jax.lax.dot_general(q_h, k_h, (((1,), (1,)), ((), ())),
                                preferred_element_type=jnp.float32)   # (S, S) f32
        s = jnp.where(allow, s, neg)
        m = jnp.max(s, axis=-1, keepdims=True)
        e = jnp.exp(s - m)
        p = e * pl.reciprocal(jnp.sum(e, axis=-1, keepdims=True), approx=True)
        outs.append(jnp.dot(p.astype(v_h.dtype), v_h,
                            preferred_element_type=jnp.float32))
    # Single lane-dense store, already in (B, S, n_head*hd) == (B, S, dim) layout.
    o_ref[0] = jnp.concatenate(outs, axis=-1).astype(o_ref.dtype)


def attention_core(q, k, v, *, n_head, n_kv, head_dim, scale):
    # q: (B, S, n_head*hd) bf16; k, v: (B, S, n_kv*hd) bf16 -> out (B, S, n_head*hd) bf16.
    # TODO(synk): flash-style KV tiling (online softmax) for long sequences.
    B, S, qd = q.shape
    kd = k.shape[-1]
    kernel = functools.partial(_attn_kernel, n_head=n_head, n_kv=n_kv,
                               head_dim=head_dim, scale=scale)
    return pl.pallas_call(
        kernel,
        out_shape=jax.ShapeDtypeStruct((B, S, qd), jnp.bfloat16),
        grid=(B,),
        in_specs=[pl.BlockSpec((1, S, qd), lambda b: (b, 0, 0)),
                  pl.BlockSpec((1, S, kd), lambda b: (b, 0, 0)),
                  pl.BlockSpec((1, S, kd), lambda b: (b, 0, 0))],
        out_specs=pl.BlockSpec((1, S, qd), lambda b: (b, 0, 0)),
        compiler_params=pltpu.CompilerParams(dimension_semantics=("parallel",)),
    )(q, k, v)


# ------------------------------- JAX glue ----------------------------------- #

def apply_rotary_emb(x, freqs_cis):
    # x: (B, S, H, hd) float32; freqs_cis: (S, hd//2, 2)
    B, S, H, hd = x.shape
    xr = x.reshape(B, S, H, hd // 2, 2)
    fc = freqs_cis.reshape(1, S, 1, hd // 2, 2)
    out0 = xr[..., 0] * fc[..., 0] - xr[..., 1] * fc[..., 1]
    out1 = xr[..., 1] * fc[..., 0] + xr[..., 0] * fc[..., 1]
    return jnp.stack([out0, out1], axis=-1).reshape(B, S, H, hd)


def transformer_block(params, x, input_pos, freqs_cis, mask, *,
                      n_head, n_local_heads, head_dim):
    # input_pos unused (kv_cache is None in the reference module).
    # TODO(synk): mask is assumed causal and generated in-kernel; arbitrary attn_mask unsupported.
    del input_pos, mask
    B, S, D = x.shape
    x2d = x.reshape(B * S, D)

    # --- attention branch: h = x + attention(attention_norm(x)) ---
    hnorm = rmsnorm(x2d, params["attention_norm_w"])                 # bf16 (M, D)
    qkv = linear(hnorm, params["wqkv"], out_dtype=jnp.float32)       # f32 (M, D + 2*kv_size)
    kv_size = n_local_heads * head_dim
    q, k, v = jnp.split(qkv, [D, D + kv_size], axis=-1)
    q = apply_rotary_emb(q.reshape(B, S, n_head, head_dim), freqs_cis)
    k = apply_rotary_emb(k.reshape(B, S, n_local_heads, head_dim), freqs_cis)
    q = q.reshape(B, S, n_head * head_dim).astype(jnp.bfloat16)      # (B, S, dim)
    k = k.reshape(B, S, kv_size).astype(jnp.bfloat16)
    v = v.reshape(B, S, kv_size).astype(jnp.bfloat16)
    scale = 1.0 / (head_dim ** 0.5)
    y = attention_core(q, k, v, n_head=n_head, n_kv=n_local_heads,
                       head_dim=head_dim, scale=scale)               # (B, S, dim) bf16
    # wo projection with the residual add fused into the kernel finalize.
    h2d = linear(y.reshape(B * S, D), params["wo"], residual=x2d,
                 out_dtype=jnp.float32)

    # --- feed-forward branch: out = h + w2(silu(w1(n)) * w3(n)), n = ffn_norm(h) ---
    hn = rmsnorm(h2d, params["ffn_norm_w"])                          # bf16
    out2d = ffn_fused(hn, params["w1"], params["w3"], params["w2"],
                      residual=h2d, out_dtype=jnp.float32)
    return out2d.reshape(B, S, D)


def init_params(key, dim, n_head, n_local_heads, head_dim, intermediate_size):
    total_head_dim = (n_head + 2 * n_local_heads) * head_dim
    ks = jax.random.split(key, 5)
    s = 0.02

    def w(k, shape):
        # stored as (in, out) == torch weight.T, in bf16 to halve HBM weight traffic
        return (jax.random.normal(k, shape, jnp.float32) * s).astype(jnp.bfloat16)

    return {
        "wqkv": w(ks[0], (dim, total_head_dim)),
        "wo":   w(ks[1], (dim, dim)),
        "w1":   w(ks[2], (dim, intermediate_size)),
        "w3":   w(ks[3], (dim, intermediate_size)),
        "w2":   w(ks[4], (intermediate_size, dim)),
        "attention_norm_w": jnp.ones((dim,), jnp.float32),   # RMSNorm init = ones
        "ffn_norm_w":       jnp.ones((dim,), jnp.float32),
    }


if __name__ == "__main__":
    # Small config consistent with ModelArgs semantics.
    B, S = 2, 8
    dim = 128
    n_head = 4
    n_local_heads = 4
    head_dim = dim // n_head                                  # 32
    hidden_dim = 4 * dim
    intermediate_size = find_multiple(int(2 * hidden_dim / 3), 256)  # 512

    key = jax.random.PRNGKey(0)
    kx, kp = jax.random.split(key)
    x = jax.random.normal(kx, (B, S, dim), jnp.float32)
    input_pos = jnp.arange(S, dtype=jnp.int32)

    # Rotary frequencies: (S, head_dim//2, 2) = (cos, sin)
    rope_base = 10000.0
    inv_freq = 1.0 / (rope_base ** (jnp.arange(0, head_dim, 2, dtype=jnp.float32) / head_dim))
    angles = jnp.outer(jnp.arange(S, dtype=jnp.float32), inv_freq)    # (S, hd//2)
    freqs_cis = jnp.stack([jnp.cos(angles), jnp.sin(angles)], axis=-1)

    # Causal mask (the kernel regenerates this in-kernel; passed for API parity only).
    causal = jnp.tril(jnp.ones((S, S), dtype=bool))
    mask = jnp.where(causal, 0.0, jnp.finfo(jnp.float32).min).astype(jnp.float32)

    params = init_params(kp, dim, n_head, n_local_heads, head_dim, intermediate_size)

    fwd = jax.jit(functools.partial(transformer_block,
                                    n_head=n_head,
                                    n_local_heads=n_local_heads,
                                    head_dim=head_dim))
    out = fwd(params, x, input_pos, freqs_cis, mask)
    jax.block_until_ready(out)
    assert out.shape == (B, S, dim) and out.dtype == jnp.float32
    assert bool(jnp.all(jnp.isfinite(out)))
    print("KERNEL_OK")
</pallas_src>

<mosaic_0001>
module attributes {stable_mosaic.version = 11 : i64} {
  func.func @_rmsnorm_kernel(%arg0: i32, %arg1: memref<16x128xf32, #tpu.memory_space<vmem>>, %arg2: memref<1x128xf32, #tpu.memory_space<vmem>>, %arg3: memref<16x128xbf16, #tpu.memory_space<vmem>>) attributes {dimension_semantics = [#tpu.dimension_semantics<parallel>], iteration_bounds = array<i64: 1>, scalar_prefetch = 0 : i64, scratch_operands = 0 : i64, tpu.core_type = #tpu.core_type<tc>, window_params = [{transform_indices = @transform_0, window_bounds = array<i64: 16, 128>}, {pipeline_mode = #tpu.pipeline_mode<synchronous>, transform_indices = @transform_1, window_bounds = array<i64: 1, 128>}, {transform_indices = @transform_2, window_bounds = array<i64: 16, 128>}]} {
    %c0 = arith.constant 0 : index
    %c0_0 = arith.constant 0 : index
    %0 = vector.load %arg1[%c0, %c0_0] : memref<16x128xf32, #tpu.memory_space<vmem>>, vector<16x128xf32>
    %1 = arith.mulf %0, %0 : vector<16x128xf32>
    %cst = arith.constant dense<0.000000e+00> : vector<16xf32>
    %2 = vector.multi_reduction <add>, %1, %cst [1] : vector<16x128xf32> to vector<16xf32>
    %3 = vector.shape_cast %2 : vector<16xf32> to vector<16x1xf32>
    %cst_1 = arith.constant 1.280000e+02 : f32
    %4 = vector.broadcast %cst_1 : f32 to vector<16x1xf32>
    %5 = arith.divf %3, %4 : vector<16x1xf32>
    %cst_2 = arith.constant 9.99999974E-6 : f32
    %6 = vector.broadcast %cst_2 : f32 to vector<16x1xf32>
    %7 = arith.addf %5, %6 : vector<16x1xf32>
    %8 = math.rsqrt %7 : vector<16x1xf32>
    %9 = vector.broadcast %8 : vector<16x1xf32> to vector<16x128xf32>
    %10 = arith.mulf %0, %9 : vector<16x128xf32>
    %c0_3 = arith.constant 0 : index
    %c0_4 = arith.constant 0 : index
    %11 = vector.load %arg2[%c0_3, %c0_4] : memref<1x128xf32, #tpu.memory_space<vmem>>, vector<1x128xf32>
    %12 = vector.broadcast %11 : vector<1x128xf32> to vector<16x128xf32>
    %13 = arith.mulf %10, %12 : vector<16x128xf32>
    %14 = arith.truncf %13 : vector<16x128xf32> to vector<16x128xbf16>
    %c0_5 = arith.constant 0 : index
    %c0_6 = arith.constant 0 : index
    %15 = vector.load %arg3[%c0_5, %c0_6] : memref<16x128xbf16, #tpu.memory_space<vmem>>, vector<16x128xbf16>
    tpu.vector_store %arg3[%c0_5, %c0_6], %14 {strides = array<i32>} : memref<16x128xbf16, #tpu.memory_space<vmem>>, vector<16x128xbf16>,
    return
  }
  func.func @transform_0(%arg0: i32) -> (i32, i32) {
    %c0_i32 = arith.constant 0 : i32
    %c0_i32_0 = arith.constant 0 : i32
    return %arg0, %c0_i32 : i32, i32
  }
  func.func @transform_1(%arg0: i32) -> (i32, i32) {
    %c0_i32 = arith.constant 0 : i32
    %c0_i32_0 = arith.constant 0 : i32
    %c0_i32_1 = arith.constant 0 : i32
    return %c0_i32, %c0_i32_0 : i32, i32
  }
  func.func @transform_2(%arg0: i32) -> (i32, i32) {
    %c0_i32 = arith.constant 0 : i32
    %c0_i32_0 = arith.constant 0 : i32
    return %arg0, %c0_i32 : i32, i32
  }
}

module attributes {stable_mosaic.version = 11 : i64} {
  func.func @_matmul_kernel(%arg0: i32, %arg1: i32, %arg2: i32, %arg3: memref<16x128xbf16, #tpu.memory_space<vmem>>, %arg4: memref<128x384xbf16, #tpu.memory_space<vmem>>, %arg5: memref<16x384xf32, #tpu.memory_space<vmem>>, %arg6: memref<16x384xf32, #tpu.memory_space<vmem>>) attributes {dimension_semantics = [#tpu.dimension_semantics<parallel>, #tpu.dimension_semantics<parallel>, #tpu.dimension_semantics<arbitrary>], iteration_bounds = array<i64: 1, 1, 1>, scalar_prefetch = 0 : i64, scratch_operands = 1 : i64, tpu.core_type = #tpu.core_type<tc>, window_params = [{transform_indices = @transform_0, window_bounds = array<i64: 16, 128>}, {transform_indices = @transform_1, window_bounds = array<i64: 128, 384>}, {transform_indices = @transform_2, window_bounds = array<i64: 16, 384>}]} {
    %c0_i32 = arith.constant 0 : i32
    %0 = arith.cmpi eq, %arg2, %c0_i32 : i32
    %1 = arith.extui %0 : i1 to i32
    %c0_i32_0 = arith.constant 0 : i32
    %2 = arith.cmpi ne, %1, %c0_i32_0 : i32
    scf.if %2 {
      %cst_10 = arith.constant 0.000000e+00 : f32
      %12 = vector.broadcast %cst_10 : f32 to vector<16x384xf32>
      %c0_11 = arith.constant 0 : index
      %c0_12 = arith.constant 0 : index
      %13 = vector.load %arg6[%c0_11, %c0_12] : memref<16x384xf32, #tpu.memory_space<vmem>>, vector<16x384xf32>
      tpu.vector_store %arg6[%c0_11, %c0_12], %12 {strides = array<i32>} : memref<16x384xf32, #tpu.memory_space<vmem>>, vector<16x384xf32>,
    } else {
    }
    %c0 = arith.constant 0 : index
    %c0_1 = arith.constant 0 : index
    %3 = vector.load %arg6[%c0, %c0_1] : memref<16x384xf32, #tpu.memory_space<vmem>>, vector<16x384xf32>
    %c0_2 = arith.constant 0 : index
    %c0_3 = arith.constant 0 : index
    %4 = vector.load %arg3[%c0_2, %c0_3] : memref<16x128xbf16, #tpu.memory_space<vmem>>, vector<16x128xbf16>
    %c0_4 = arith.constant 0 : index
    %c0_5 = arith.constant 0 : index
    %5 = vector.load %arg4[%c0_4, %c0_5] : memref<128x384xbf16, #tpu.memory_space<vmem>>, vector<128x384xbf16>
    %cst = arith.constant dense<0.000000e+00> : vector<16x384xf32>
    %6 = tpu.matmul %4, %5, %cst {dimension_numbers = #tpu.dot_dimension_numbers<[1], [0], [0], [1], [0, 0, 1, 1], [], []>} : vector<16x128xbf16>, vector<128x384xbf16>, vector<16x384xf32> -> vector<16x384xf32>
    %7 = arith.addf %3, %6 : vector<16x384xf32>
    %c0_6 = arith.constant 0 : index
    %c0_7 = arith.constant 0 : index
    %8 = vector.load %arg6[%c0_6, %c0_7] : memref<16x384xf32, #tpu.memory_space<vmem>>, vector<16x384xf32>
    tpu.vector_store %arg6[%c0_6, %c0_7], %7 {strides = array<i32>} : memref<16x384xf32, #tpu.memory_space<vmem>>, vector<16x384xf32>,
    %c0_i32_8 = arith.constant 0 : i32
    %9 = arith.cmpi eq, %arg2, %c0_i32_8 : i32
    %10 = arith.extui %9 : i1 to i32
    %c0_i32_9 = arith.constant 0 : i32
    %11 = arith.cmpi ne, %10, %c0_i32_9 : i32
    scf.if %11 {
      %c0_10 = arith.constant 0 : index
      %c0_11 = arith.constant 0 : index
      %12 = vector.load %arg6[%c0_10, %c0_11] : memref<16x384xf32, #tpu.memory_space<vmem>>, vector<16x384xf32>
      %c0_12 = arith.constant 0 : index
      %c0_13 = arith.constant 0 : index
      %13 = vector.load %arg5[%c0_12, %c0_13] : memref<16x384xf32, #tpu.memory_space<vmem>>, vector<16x384xf32>
      tpu.vector_store %arg5[%c0_12, %c0_13], %12 {strides = array<i32>} : memref<16x384xf32, #tpu.memory_space<vmem>>, vector<16x384xf32>,
    } else {
    }
    return
  }
  func.func @transform_0(%arg0: i32, %arg1: i32, %arg2: i32) -> (i32, i32) {
    %c0_i32 = arith.constant 0 : i32
    return %arg0, %arg2 : i32, i32
  }
  func.func @transform_1(%arg0: i32, %arg1: i32, %arg2: i32) -> (i32, i32) {
    %c0_i32 = arith.constant 0 : i32
    return %arg2, %arg1 : i32, i32
  }
  func.func @transform_2(%arg0: i32, %arg1: i32, %arg2: i32) -> (i32, i32) {
    %c0_i32 = arith.constant 0 : i32
    return %arg0, %arg1 : i32, i32
  }
}

module attributes {stable_mosaic.version = 11 : i64} {
  func.func @_attn_kernel(%arg0: i32, %arg1: memref<1x8x128xbf16, #tpu.memory_space<vmem>>, %arg2: memref<1x8x128xbf16, #tpu.memory_space<vmem>>, %arg3: memref<1x8x128xbf16, #tpu.memory_space<vmem>>, %arg4: memref<1x8x128xbf16, #tpu.memory_space<vmem>>) attributes {dimension_semantics = [#tpu.dimension_semantics<parallel>], iteration_bounds = array<i64: 2>, scalar_prefetch = 0 : i64, scratch_operands = 0 : i64, tpu.core_type = #tpu.core_type<tc>, window_params = [{transform_indices = @transform_0, window_bounds = array<i64: 1, 8, 128>}, {transform_indices = @transform_1, window_bounds = array<i64: 1, 8, 128>}, {transform_indices = @transform_2, window_bounds = array<i64: 1, 8, 128>}, {transform_indices = @transform_3, window_bounds = array<i64: 1, 8, 128>}]} {
    %0 = tpu.iota {dimensions = array<i32: 0>} : vector<8x8xi32>
    %1 = tpu.iota {dimensions = array<i32: 1>} : vector<8x8xi32>
    %2 = arith.cmpi sle, %1, %0 : vector<8x8xi32>
    %c0 = arith.constant 0 : index
    %c0_0 = arith.constant 0 : index
    %c0_1 = arith.constant 0 : index
    %3 = vector.load %arg1[%c0, %c0_0, %c0_1] : memref<1x8x128xbf16, #tpu.memory_space<vmem>>, vector<1x8x128xbf16>
    %4 = vector.shape_cast %3 : vector<1x8x128xbf16> to vector<8x128xbf16>
    %c0_2 = arith.constant 0 : index
    %c0_3 = arith.constant 0 : index
    %c0_4 = arith.constant 0 : index
    %5 = vector.load %arg2[%c0_2, %c0_3, %c0_4] : memref<1x8x128xbf16, #tpu.memory_space<vmem>>, vector<1x8x128xbf16>
    %6 = vector.shape_cast %5 : vector<1x8x128xbf16> to vector<8x128xbf16>
    %c0_5 = arith.constant 0 : index
    %c0_6 = arith.constant 0 : index
    %c0_7 = arith.constant 0 : index
    %7 = vector.load %arg3[%c0_5, %c0_6, %c0_7] : memref<1x8x128xbf16, #tpu.memory_space<vmem>>, vector<1x8x128xbf16>
    %8 = vector.shape_cast %7 : vector<1x8x128xbf16> to vector<8x128xbf16>
    %9 = vector.extract_strided_slice %4 {offsets = [0, 0], sizes = [8, 32], strides = [1, 1]} : vector<8x128xbf16> to vector<8x32xbf16>
    %cst = arith.constant 1.767580e-01 : bf16
    %10 = vector.broadcast %cst : bf16 to vector<8x32xbf16>
    %11 = arith.mulf %9, %10 : vector<8x32xbf16>
    %12 = vector.extract_strided_slice %6 {offsets = [0, 0], sizes = [8, 32], strides = [1, 1]} : vector<8x128xbf16> to vector<8x32xbf16>
    %13 = vector.extract_strided_slice %8 {offsets = [0, 0], sizes = [8, 32], strides = [1, 1]} : vector<8x128xbf16> to vector<8x32xbf16>
    %cst_8 = arith.constant dense<0.000000e+00> : vector<8x8xf32>
    %14 = tpu.matmul %11, %12, %cst_8 {dimension_numbers = #tpu.dot_dimension_numbers<[1], [1], [0], [0], [0, 0, 1, 0], [], []>} : vector<8x32xbf16>, vector<8x32xbf16>, vector<8x8xf32> -> vector<8x8xf32>
    %cst_9 = arith.constant -3.40282347E+38 : f32
    %15 = vector.broadcast %cst_9 : f32 to vector<8x8xf32>
    %16 = arith.select %2, %14, %15 : vector<8x8xi1>, vector<8x8xf32>
    %cst_10 = arith.constant dense<0xFF800000> : vector<8xf32>
    %17 = vector.multi_reduction <maximumf>, %16, %cst_10 [1] : vector<8x8xf32> to vector<8xf32>
    %18 = vector.shape_cast %17 : vector<8xf32> to vector<8x1xf32>
    %19 = vector.broadcast %18 : vector<8x1xf32> to vector<8x8xf32>
    %20 = arith.subf %16, %19 : vector<8x8xf32>
    %21 = math.exp %20 : vector<8x8xf32>
    %cst_11 = arith.constant dense<0.000000e+00> : vector<8xf32>
    %22 = vector.multi_reduction <add>, %21, %cst_11 [1] : vector<8x8xf32> to vector<8xf32>
    %23 = vector.shape_cast %22 : vector<8xf32> to vector<8x1xf32>
    %24 = tpu.reciprocal %23 {approx = true} : vector<8x1xf32> -> vector<8x1xf32>
    %25 = vector.broadcast %24 : vector<8x1xf32> to vector<8x8xf32>
    %26 = arith.mulf %21, %25 : vector<8x8xf32>
    %27 = arith.truncf %26 : vector<8x8xf32> to vector<8x8xbf16>
    %cst_12 = arith.constant dense<0.000000e+00> : vector<8x32xf32>
    %28 = tpu.matmul %27, %13, %cst_12 {dimension_numbers = #tpu.dot_dimension_numbers<[1], [0], [0], [1], [0, 0, 1, 1], [], []>} : vector<8x8xbf16>, vector<8x32xbf16>, vector<8x32xf32> -> vector<8x32xf32>
    %29 = vector.extract_strided_slice %4 {offsets = [0, 32], sizes = [8, 32], strides = [1, 1]} : vector<8x128xbf16> to vector<8x32xbf16>
    %cst_13 = arith.constant 1.767580e-01 : bf16
    %30 = vector.broadcast %cst_13 : bf16 to vector<8x32xbf16>
    %31 = arith.mulf %29, %30 : vector<8x32xbf16>
    %32 = vector.extract_strided_slice %6 {offsets = [0, 32], sizes = [8, 32], strides = [1, 1]} : vector<8x128xbf16> to vector<8x32xbf16>
    %33 = vector.extract_strided_slice %8 {offsets = [0, 32], sizes = [8, 32], strides = [1, 1]} : vector<8x128xbf16> to vector<8x32xbf16>
    %cst_14 = arith.constant dense<0.000000e+00> : vector<8x8xf32>
    %34 = tpu.matmul %31, %32, %cst_14 {dimension_numbers = #tpu.dot_dimension_numbers<[1], [1], [0], [0], [0, 0, 1, 0], [], []>} : vector<8x32xbf16>, vector<8x32xbf16>, vector<8x8xf32> -> vector<8x8xf32>
    %cst_15 = arith.constant -3.40282347E+38 : f32
    %35 = vector.broadcast %cst_15 : f32 to vector<8x8xf32>
    %36 = arith.select %2, %34, %35 : vector<8x8xi1>, vector<8x8xf32>
    %cst_16 = arith.constant dense<0xFF800000> : vector<8xf32>
    %37 = vector.multi_reduction <maximumf>, %36, %cst_16 [1] : vector<8x8xf32> to vector<8xf32>
    %38 = vector.shape_cast %37 : vector<8xf32> to vector<8x1xf32>
    %39 = vector.broadcast %38 : vector<8x1xf32> to vector<8x8xf32>
    %40 = arith.subf %36, %39 : vector<8x8xf32>
    %41 = math.exp %40 : vector<8x8xf32>
    %cst_17 = arith.constant dense<0.000000e+00> : vector<8xf32>
    %42 = vector.multi_reduction <add>, %41, %cst_17 [1] : vector<8x8xf32> to vector<8xf32>
    %43 = vector.shape_cast %42 : vector<8xf32> to vector<8x1xf32>
    %44 = tpu.reciprocal %43 {approx = true} : vector<8x1xf32> -> vector<8x1xf32>
    %45 = vector.broadcast %44 : vector<8x1xf32> to vector<8x8xf32>
    %46 = arith.mulf %41, %45 : vector<8x8xf32>
    %47 = arith.truncf %46 : vector<8x8xf32> to vector<8x8xbf16>
    %cst_18 = arith.constant dense<0.000000e+00> : vector<8x32xf32>
    %48 = tpu.matmul %47, %33, %cst_18 {dimension_numbers = #tpu.dot_dimension_numbers<[1], [0], [0], [1], [0, 0, 1, 1], [], []>} : vector<8x8xbf16>, vector<8x32xbf16>, vector<8x32xf32> -> vector<8x32xf32>
    %49 = vector.extract_strided_slice %4 {offsets = [0, 64], sizes = [8, 32], strides = [1, 1]} : vector<8x128xbf16> to vector<8x32xbf16>
    %cst_19 = arith.constant 1.767580e-01 : bf16
    %50 = vector.broadcast %cst_19 : bf16 to vector<8x32xbf16>
    %51 = arith.mulf %49, %50 : vector<8x32xbf16>
    %52 = vector.extract_strided_slice %6 {offsets = [0, 64], sizes = [8, 32], strides = [1, 1]} : vector<8x128xbf16> to vector<8x32xbf16>
    %53 = vector.extract_strided_slice %8 {offsets = [0, 64], sizes = [8, 32], strides = [1, 1]} : vector<8x128xbf16> to vector<8x32xbf16>
    %cst_20 = arith.constant dense<0.000000e+00> : vector<8x8xf32>
    %54 = tpu.matmul %51, %52, %cst_20 {dimension_numbers = #tpu.dot_dimension_numbers<[1], [1], [0], [0], [0, 0, 1, 0], [], []>} : vector<8x32xbf16>, vector<8x32xbf16>, vector<8x8xf32> -> vector<8x8xf32>
    %cst_21 = arith.constant -3.40282347E+38 : f32
    %55 = vector.broadcast %cst_21 : f32 to vector<8x8xf32>
    %56 = arith.select %2, %54, %55 : vector<8x8xi1>, vector<8x8xf32>
    %cst_22 = arith.constant dense<0xFF800000> : vector<8xf32>
    %57 = vector.multi_reduction <maximumf>, %56, %cst_22 [1] : vector<8x8xf32> to vector<8xf32>
    %58 = vector.shape_cast %57 : vector<8xf32> to vector<8x1xf32>
    %59 = vector.broadcast %58 : vector<8x1xf32> to vector<8x8xf32>
    %60 = arith.subf %56, %59 : vector<8x8xf32>
    %61 = math.exp %60 : vector<8x8xf32>
    %cst_23 = arith.constant dense<0.000000e+00> : vector<8xf32>
    %62 = vector.multi_reduction <add>, %61, %cst_23 [1] : vector<8x8xf32> to vector<8xf32>
    %63 = vector.shape_cast %62 : vector<8xf32> to vector<8x1xf32>
    %64 = tpu.reciprocal %63 {approx = true} : vector<8x1xf32> -> vector<8x1xf32>
    %65 = vector.broadcast %64 : vector<8x1xf32> to vector<8x8xf32>
    %66 = arith.mulf %61, %65 : vector<8x8xf32>
    %67 = arith.truncf %66 : vector<8x8xf32> to vector<8x8xbf16>
    %cst_24 = arith.constant dense<0.000000e+00> : vector<8x32xf32>
    %68 = tpu.matmul %67, %53, %cst_24 {dimension_numbers = #tpu.dot_dimension_numbers<[1], [0], [0], [1], [0, 0, 1, 1], [], []>} : vector<8x8xbf16>, vector<8x32xbf16>, vector<8x32xf32> -> vector<8x32xf32>
    %69 = vector.extract_strided_slice %4 {offsets = [0, 96], sizes = [8, 32], strides = [1, 1]} : vector<8x128xbf16> to vector<8x32xbf16>
    %cst_25 = arith.constant 1.767580e-01 : bf16
    %70 = vector.broadcast %cst_25 : bf16 to vector<8x32xbf16>
    %71 = arith.mulf %69, %70 : vector<8x32xbf16>
    %72 = vector.extract_strided_slice %6 {offsets = [0, 96], sizes = [8, 32], strides = [1, 1]} : vector<8x128xbf16> to vector<8x32xbf16>
    %73 = vector.extract_strided_slice %8 {offsets = [0, 96], sizes = [8, 32], strides = [1, 1]} : vector<8x128xbf16> to vector<8x32xbf16>
    %cst_26 = arith.constant dense<0.000000e+00> : vector<8x8xf32>
    %74 = tpu.matmul %71, %72, %cst_26 {dimension_numbers = #tpu.dot_dimension_numbers<[1], [1], [0], [0], [0, 0, 1, 0], [], []>} : vector<8x32xbf16>, vector<8x32xbf16>, vector<8x8xf32> -> vector<8x8xf32>
    %cst_27 = arith.constant -3.40282347E+38 : f32
    %75 = vector.broadcast %cst_27 : f32 to vector<8x8xf32>
    %76 = arith.select %2, %74, %75 : vector<8x8xi1>, vector<8x8xf32>
    %cst_28 = arith.constant dense<0xFF800000> : vector<8xf32>
    %77 = vector.multi_reduction <maximumf>, %76, %cst_28 [1] : vector<8x8xf32> to vector<8xf32>
    %78 = vector.shape_cast %77 : vector<8xf32> to vector<8x1xf32>
    %79 = vector.broadcast %78 : vector<8x1xf32> to vector<8x8xf32>
    %80 = arith.subf %76, %79 : vector<8x8xf32>
    %81 = math.exp %80 : vector<8x8xf32>
    %cst_29 = arith.constant dense<0.000000e+00> : vector<8xf32>
    %82 = vector.multi_reduction <add>, %81, %cst_29 [1] : vector<8x8xf32> to vector<8xf32>
    %83 = vector.shape_cast %82 : vector<8xf32> to vector<8x1xf32>
    %84 = tpu.reciprocal %83 {approx = true} : vector<8x1xf32> -> vector<8x1xf32>
    %85 = vector.broadcast %84 : vector<8x1xf32> to vector<8x8xf32>
    %86 = arith.mulf %81, %85 : vector<8x8xf32>
    %87 = arith.truncf %86 : vector<8x8xf32> to vector<8x8xbf16>
    %cst_30 = arith.constant dense<0.000000e+00> : vector<8x32xf32>
    %88 = tpu.matmul %87, %73, %cst_30 {dimension_numbers = #tpu.dot_dimension_numbers<[1], [0], [0], [1], [0, 0, 1, 1], [], []>} : vector<8x8xbf16>, vector<8x32xbf16>, vector<8x32xf32> -> vector<8x32xf32>
    %89 = tpu.concatenate %28, %48, %68, %88 in 1 : vector<8x32xf32>, vector<8x32xf32>, vector<8x32xf32>, vector<8x32xf32> -> vector<8x128xf32>
    %90 = arith.truncf %89 : vector<8x128xf32> to vector<8x128xbf16>
    %c0_31 = arith.constant 0 : index
    %c0_32 = arith.constant 0 : index
    %c0_33 = arith.constant 0 : index
    %91 = vector.load %arg4[%c0_31, %c0_32, %c0_33] : memref<1x8x128xbf16, #tpu.memory_space<vmem>>, vector<1x8x128xbf16>
    %92 = vector.shape_cast %91 : vector<1x8x128xbf16> to vector<8x128xbf16>
    %93 = vector.shape_cast %90 : vector<8x128xbf16> to vector<1x8x128xbf16>
    tpu.vector_store %arg4[%c0_31, %c0_32, %c0_33], %93 {strides = array<i32>} : memref<1x8x128xbf16, #tpu.memory_space<vmem>>, vector<1x8x128xbf16>,
    return
  }
  func.func @transform_0(%arg0: i32) -> (i32, i32, i32) {
    %c0_i32 = arith.constant 0 : i32
    %c0_i32_0 = arith.constant 0 : i32
    %c0_i32_1 = arith.constant 0 : i32
    return %arg0, %c0_i32, %c0_i32_0 : i32, i32, i32
  }
  func.func @transform_1(%arg0: i32) -> (i32, i32, i32) {
    %c0_i32 = arith.constant 0 : i32
    %c0_i32_0 = arith.constant 0 : i32
    %c0_i32_1 = arith.constant 0 : i32
    return %arg0, %c0_i32, %c0_i32_0 : i32, i32, i32
  }
  func.func @transform_2(%arg0: i32) -> (i32, i32, i32) {
    %c0_i32 = arith.constant 0 : i32
    %c0_i32_0 = arith.constant 0 : i32
    %c0_i32_1 = arith.constant 0 : i32
    return %arg0, %c0_i32, %c0_i32_0 : i32, i32, i32
  }
  func.func @transform_3(%arg0: i32) -> (i32, i32, i32) {
    %c0_i32 = arith.constant 0 : i32
    %c0_i32_0 = arith.constant 0 : i32
    %c0_i32_1 = arith.constant 0 : i32
    return %arg0, %c0_i32, %c0_i32_0 : i32, i32, i32
  }
}

module attributes {stable_mosaic.version = 11 : i64} {
  func.func @_matmul_res_kernel(%arg0: i32, %arg1: i32, %arg2: i32, %arg3: memref<16x128xbf16, #tpu.memory_space<vmem>>, %arg4: memref<128x128xbf16, #tpu.memory_space<vmem>>, %arg5: memref<16x128xf32, #tpu.memory_space<vmem>>, %arg6: memref<16x128xf32, #tpu.memory_space<vmem>>, %arg7: memref<16x128xf32, #tpu.memory_space<vmem>>) attributes {dimension_semantics = [#tpu.dimension_semantics<parallel>, #tpu.dimension_semantics<parallel>, #tpu.dimension_semantics<arbitrary>], iteration_bounds = array<i64: 1, 1, 1>, scalar_prefetch = 0 : i64, scratch_operands = 1 : i64, tpu.core_type = #tpu.core_type<tc>, window_params = [{transform_indices = @transform_0, window_bounds = array<i64: 16, 128>}, {transform_indices = @transform_1, window_bounds = array<i64: 128, 128>}, {transform_indices = @transform_2, window_bounds = array<i64: 16, 128>}, {transform_indices = @transform_3, window_bounds = array<i64: 16, 128>}]} {
    %c0_i32 = arith.constant 0 : i32
    %0 = arith.cmpi eq, %arg2, %c0_i32 : i32
    %1 = arith.extui %0 : i1 to i32
    %c0_i32_0 = arith.constant 0 : i32
    %2 = arith.cmpi ne, %1, %c0_i32_0 : i32
    scf.if %2 {
      %cst_10 = arith.constant 0.000000e+00 : f32
      %12 = vector.broadcast %cst_10 : f32 to vector<16x128xf32>
      %c0_11 = arith.constant 0 : index
      %c0_12 = arith.constant 0 : index
      %13 = vector.load %arg7[%c0_11, %c0_12] : memref<16x128xf32, #tpu.memory_space<vmem>>, vector<16x128xf32>
      tpu.vector_store %arg7[%c0_11, %c0_12], %12 {strides = array<i32>} : memref<16x128xf32, #tpu.memory_space<vmem>>, vector<16x128xf32>,
    } else {
    }
    %c0 = arith.constant 0 : index
    %c0_1 = arith.constant 0 : index
    %3 = vector.load %arg7[%c0, %c0_1] : memref<16x128xf32, #tpu.memory_space<vmem>>, vector<16x128xf32>
    %c0_2 = arith.constant 0 : index
    %c0_3 = arith.constant 0 : index
    %4 = vector.load %arg3[%c0_2, %c0_3] : memref<16x128xbf16, #tpu.memory_space<vmem>>, vector<16x128xbf16>
    %c0_4 = arith.constant 0 : index
    %c0_5 = arith.constant 0 : index
    %5 = vector.load %arg4[%c0_4, %c0_5] : memref<128x128xbf16, #tpu.memory_space<vmem>>, vector<128x128xbf16>
    %cst = arith.constant dense<0.000000e+00> : vector<16x128xf32>
    %6 = tpu.matmul %4, %5, %cst {dimension_numbers = #tpu.dot_dimension_numbers<[1], [0], [0], [1], [0, 0, 1, 1], [], []>} : vector<16x128xbf16>, vector<128x128xbf16>, vector<16x128xf32> -> vector<16x128xf32>
    %7 = arith.addf %3, %6 : vector<16x128xf32>
    %c0_6 = arith.constant 0 : index
    %c0_7 = arith.constant 0 : index
    %8 = vector.load %arg7[%c0_6, %c0_7] : memref<16x128xf32, #tpu.memory_space<vmem>>, vector<16x128xf32>
    tpu.vector_store %arg7[%c0_6, %c0_7], %7 {strides = array<i32>} : memref<16x128xf32, #tpu.memory_space<vmem>>, vector<16x128xf32>,
    %c0_i32_8 = arith.constant 0 : i32
    %9 = arith.cmpi eq, %arg2, %c0_i32_8 : i32
    %10 = arith.extui %9 : i1 to i32
    %c0_i32_9 = arith.constant 0 : i32
    %11 = arith.cmpi ne, %10, %c0_i32_9 : i32
    scf.if %11 {
      %c0_10 = arith.constant 0 : index
      %c0_11 = arith.constant 0 : index
      %12 = vector.load %arg7[%c0_10, %c0_11] : memref<16x128xf32, #tpu.memory_space<vmem>>, vector<16x128xf32>
      %c0_12 = arith.constant 0 : index
      %c0_13 = arith.constant 0 : index
      %13 = vector.load %arg5[%c0_12, %c0_13] : memref<16x128xf32, #tpu.memory_space<vmem>>, vector<16x128xf32>
      %14 = arith.addf %12, %13 : vector<16x128xf32>
      %c0_14 = arith.constant 0 : index
      %c0_15 = arith.constant 0 : index
      %15 = vector.load %arg6[%c0_14, %c0_15] : memref<16x128xf32, #tpu.memory_space<vmem>>, vector<16x128xf32>
      tpu.vector_store %arg6[%c0_14, %c0_15], %14 {strides = array<i32>} : memref<16x128xf32, #tpu.memory_space<vmem>>, vector<16x128xf32>,
    } else {
    }
    return
  }
  func.func @transform_0(%arg0: i32, %arg1: i32, %arg2: i32) -> (i32, i32) {
    %c0_i32 = arith.constant 0 : i32
    return %arg0, %arg2 : i32, i32
  }
  func.func @transform_1(%arg0: i32, %arg1: i32, %arg2: i32) -> (i32, i32) {
    %c0_i32 = arith.constant 0 : i32
    return %arg2, %arg1 : i32, i32
  }
  func.func @transform_2(%arg0: i32, %arg1: i32, %arg2: i32) -> (i32, i32) {
    %c0_i32 = arith.constant 0 : i32
    return %arg0, %arg1 : i32, i32
  }
  func.func @transform_3(%arg0: i32, %arg1: i32, %arg2: i32) -> (i32, i32) {
    %c0_i32 = arith.constant 0 : i32
    return %arg0, %arg1 : i32, i32
  }
}

module attributes {stable_mosaic.version = 11 : i64} {
  func.func @_ffn_kernel(%arg0: i32, %arg1: i32, %arg2: memref<16x128xbf16, #tpu.memory_space<vmem>>, %arg3: memref<128x512xbf16, #tpu.memory_space<vmem>>, %arg4: memref<128x512xbf16, #tpu.memory_space<vmem>>, %arg5: memref<512x128xbf16, #tpu.memory_space<vmem>>, %arg6: memref<16x128xf32, #tpu.memory_space<vmem>>, %arg7: memref<16x128xf32, #tpu.memory_space<vmem>>, %arg8: memref<16x128xf32, #tpu.memory_space<vmem>>) attributes {dimension_semantics = [#tpu.dimension_semantics<parallel>, #tpu.dimension_semantics<arbitrary>], iteration_bounds = array<i64: 1, 1>, scalar_prefetch = 0 : i64, scratch_operands = 1 : i64, tpu.core_type = #tpu.core_type<tc>, window_params = [{transform_indices = @transform_0, window_bounds = array<i64: 16, 128>}, {transform_indices = @transform_1, window_bounds = array<i64: 128, 512>}, {transform_indices = @transform_2, window_bounds = array<i64: 128, 512>}, {transform_indices = @transform_3, window_bounds = array<i64: 512, 128>}, {transform_indices = @transform_4, window_bounds = array<i64: 16, 128>}, {transform_indices = @transform_5, window_bounds = array<i64: 16, 128>}]} {
    %c0_i32 = arith.constant 0 : i32
    %0 = arith.cmpi eq, %arg1, %c0_i32 : i32
    %1 = arith.extui %0 : i1 to i32
    %c0_i32_0 = arith.constant 0 : i32
    %2 = arith.cmpi ne, %1, %c0_i32_0 : i32
    scf.if %2 {
      %cst_17 = arith.constant 0.000000e+00 : f32
      %24 = vector.broadcast %cst_17 : f32 to vector<16x128xf32>
      %c0_18 = arith.constant 0 : index
      %c0_19 = arith.constant 0 : index
      %25 = vector.load %arg8[%c0_18, %c0_19] : memref<16x128xf32, #tpu.memory_space<vmem>>, vector<16x128xf32>
      tpu.vector_store %arg8[%c0_18, %c0_19], %24 {strides = array<i32>} : memref<16x128xf32, #tpu.memory_space<vmem>>, vector<16x128xf32>,
    } else {
    }
    %c0 = arith.constant 0 : index
    %c0_1 = arith.constant 0 : index
    %3 = vector.load %arg2[%c0, %c0_1] : memref<16x128xbf16, #tpu.memory_space<vmem>>, vector<16x128xbf16>
    %c0_2 = arith.constant 0 : index
    %c0_3 = arith.constant 0 : index
    %4 = vector.load %arg3[%c0_2, %c0_3] : memref<128x512xbf16, #tpu.memory_space<vmem>>, vector<128x512xbf16>
    %cst = arith.constant dense<0.000000e+00> : vector<16x512xf32>
    %5 = tpu.matmul %3, %4, %cst {dimension_numbers = #tpu.dot_dimension_numbers<[1], [0], [0], [1], [0, 0, 1, 1], [], []>} : vector<16x128xbf16>, vector<128x512xbf16>, vector<16x512xf32> -> vector<16x512xf32>
    %c0_4 = arith.constant 0 : index
    %c0_5 = arith.constant 0 : index
    %6 = vector.load %arg4[%c0_4, %c0_5] : memref<128x512xbf16, #tpu.memory_space<vmem>>, vector<128x512xbf16>
    %cst_6 = arith.constant dense<0.000000e+00> : vector<16x512xf32>
    %7 = tpu.matmul %3, %6, %cst_6 {dimension_numbers = #tpu.dot_dimension_numbers<[1], [0], [0], [1], [0, 0, 1, 1], [], []>} : vector<16x128xbf16>, vector<128x512xbf16>, vector<16x512xf32> -> vector<16x512xf32>
    %8 = arith.negf %5 : vector<16x512xf32>
    %9 = math.exp %8 : vector<16x512xf32>
    %cst_7 = arith.constant 1.000000e+00 : f32
    %10 = vector.broadcast %cst_7 : f32 to vector<16x512xf32>
    %11 = arith.addf %10, %9 : vector<16x512xf32>
    %12 = arith.divf %10, %11 : vector<16x512xf32>
    %13 = arith.mulf %5, %12 : vector<16x512xf32>
    %14 = arith.mulf %13, %7 : vector<16x512xf32>
    %c0_8 = arith.constant 0 : index
    %c0_9 = arith.constant 0 : index
    %15 = vector.load %arg8[%c0_8, %c0_9] : memref<16x128xf32, #tpu.memory_space<vmem>>, vector<16x128xf32>
    %16 = arith.truncf %14 : vector<16x512xf32> to vector<16x512xbf16>
    %c0_10 = arith.constant 0 : index
    %c0_11 = arith.constant 0 : index
    %17 = vector.load %arg5[%c0_10, %c0_11] : memref<512x128xbf16, #tpu.memory_space<vmem>>, vector<512x128xbf16>
    %cst_12 = arith.constant dense<0.000000e+00> : vector<16x128xf32>
    %18 = tpu.matmul %16, %17, %cst_12 {dimension_numbers = #tpu.dot_dimension_numbers<[1], [0], [0], [1], [0, 0, 1, 1], [], []>} : vector<16x512xbf16>, vector<512x128xbf16>, vector<16x128xf32> -> vector<16x128xf32>
    %19 = arith.addf %15, %18 : vector<16x128xf32>
    %c0_13 = arith.constant 0 : index
    %c0_14 = arith.constant 0 : index
    %20 = vector.load %arg8[%c0_13, %c0_14] : memref<16x128xf32, #tpu.memory_space<vmem>>, vector<16x128xf32>
    tpu.vector_store %arg8[%c0_13, %c0_14], %19 {strides = array<i32>} : memref<16x128xf32, #tpu.memory_space<vmem>>, vector<16x128xf32>,
    %c0_i32_15 = arith.constant 0 : i32
    %21 = arith.cmpi eq, %arg1, %c0_i32_15 : i32
    %22 = arith.extui %21 : i1 to i32
    %c0_i32_16 = arith.constant 0 : i32
    %23 = arith.cmpi ne, %22, %c0_i32_16 : i32
    scf.if %23 {
      %c0_17 = arith.constant 0 : index
      %c0_18 = arith.constant 0 : index
      %24 = vector.load %arg8[%c0_17, %c0_18] : memref<16x128xf32, #tpu.memory_space<vmem>>, vector<16x128xf32>
      %c0_19 = arith.constant 0 : index
      %c0_20 = arith.constant 0 : index
      %25 = vector.load %arg6[%c0_19, %c0_20] : memref<16x128xf32, #tpu.memory_space<vmem>>, vector<16x128xf32>
      %26 = arith.addf %24, %25 : vector<16x128xf32>
      %c0_21 = arith.constant 0 : index
      %c0_22 = arith.constant 0 : index
      %27 = vector.load %arg7[%c0_21, %c0_22] : memref<16x128xf32, #tpu.memory_space<vmem>>, vector<16x128xf32>
      tpu.vector_store %arg7[%c0_21, %c0_22], %26 {strides = array<i32>} : memref<16x128xf32, #tpu.memory_space<vmem>>, vector<16x128xf32>,
    } else {
    }
    return
  }
  func.func @transform_0(%arg0: i32, %arg1: i32) -> (i32, i32) {
    %c0_i32 = arith.constant 0 : i32
    %c0_i32_0 = arith.constant 0 : i32
    return %arg0, %c0_i32 : i32, i32
  }
  func.func @transform_1(%arg0: i32, %arg1: i32) -> (i32, i32) {
    %c0_i32 = arith.constant 0 : i32
    %c0_i32_0 = arith.constant 0 : i32
    return %c0_i32, %arg1 : i32, i32
  }
  func.func @transform_2(%arg0: i32, %arg1: i32) -> (i32, i32) {
    %c0_i32 = arith.constant 0 : i32
    %c0_i32_0 = arith.constant 0 : i32
    return %c0_i32, %arg1 : i32, i32
  }
  func.func @transform_3(%arg0: i32, %arg1: i32) -> (i32, i32) {
    %c0_i32 = arith.constant 0 : i32
    %c0_i32_0 = arith.constant 0 : i32
    return %arg1, %c0_i32 : i32, i32
  }
  func.func @transform_4(%arg0: i32, %arg1: i32) -> (i32, i32) {
    %c0_i32 = arith.constant 0 : i32
    %c0_i32_0 = arith.constant 0 : i32
    return %arg0, %c0_i32 : i32, i32
  }
  func.func @transform_5(%arg0: i32, %arg1: i32) -> (i32, i32) {
    %c0_i32 = arith.constant 0 : i32
    %c0_i32_0 = arith.constant 0 : i32
    return %arg0, %c0_i32 : i32, i32
  }
}

</mosaic_0001>

<bundles_post_ra>
// kernel: transformer_block.6
= control target key start
LH: loop header
LB: loop body
LE: loop exit
PB: predicated region body
PF: predicated region fallthrough
CT: control target
= control target key end

     0   :  { %s92_s0 = inlined_call_operand.vmem [shape: f32[16,128], index: 0, kind: input, shape index: {}]   ;;  %s93_s1 = inlined_call_operand.vmem [shape: f32[1,128], index: 1, kind: input, shape index: {}]   ;;  %s94_s2 = inlined_call_operand.vmem [shape: bf16[16,128], index: 2, kind: output, shape index: {}]  }
   0x1   :  { %v11_v0 = vld [vmem:[%s92_s0] sm:$0xff]  ;;  %v12_v1 = vld [vmem:[%s92_s0 + $0x8] sm:$0xff] }
   0x2   :  { %v13_v2 = vmul.f32 %v11_v0, %v11_v0  ;;  %v14_v3 = vmul.f32 %v12_v1, %v12_v1  ;;  %v51_v13 = vld [vmem:[%s93_s1] ss:$0 sm:$0xff] }
   0x4   :  { %15 = vadd.xlane.f32.xlu0 %v13_v2 }
   0x8   :  { %17 = vadd.xlane.f32.xlu0 %v14_v3 }
  0x91   :  { %v16_v4 = vpop.xlane.xlu0 %15 }
  0x92   :  { %v20_v5 = vmul.f32 0.0078125, %v16_v4 }
  0x94   :  { %v22_v6 = vadd.f32 1e-05, %v20_v5 }
  0x95   :  { %v18_v7 = vpop.xlane.xlu0 %17 }
  0x96   :  { %61 = vrsqrt.f32 %v22_v6  ;;  %v21_v8 = vmul.f32 0.0078125, %v18_v7 }
  0x98   :  { %v23_v9 = vadd.f32 1e-05, %v21_v8 }
  0x9a   :  { %63 = vrsqrt.f32 %v23_v9 }
  0xa0   :  { %v62_v10 = vpop.eup %61 }
  0xa1   :  { %v26_v11 = vmul.f32 %v62_v10, %v11_v0 }
  0xa3   :  { %v35_v15 = vmul.f32 %v51_v13, %v26_v11 }
  0xa4   :  { %v64_v12 = vpop.eup %63 }
  0xa5   :  { %v27_v14 = vmul.f32 %v64_v12, %v12_v1 }
  0xa7   :  { %v36_v16 = vmul.f32 %v51_v13, %v27_v14 }
  0xa9   :  { %v59_v17 = vpack.c.bf16 %v36_v16, %v35_v15 }
  0xab   :  { %60 = vst [vmem:[%s94_s2] sm:$0xff] %v59_v17  }

// kernel: transformer_block.7
= control target key start
LH: loop header
LB: loop body
LE: loop exit
PB: predicated region body
PF: predicated region fallthrough
CT: control target
= control target key end

     0   :  { %7 = vsyncpa [#allocation4], 0  ;;  %s443_s9 = smov [#allocation3]   ;;  %s497_s0 = inlined_call_operand.vmem [shape: bf16[16,128], index: 0, kind: input, shape index: {}]   ;;  %s498_s1 = inlined_call_operand.hbm [shape: bf16[128,384], index: 1, kind: input, shape index: {}]   ;;  %s499_s2 = inlined_call_operand.vmem [shape: f32[16,384], index: 2, kind: output, shape index: {}]  }
   0x1   :  { %s15_s10 = sshll.u32 %s443_s9, 4  ;;  %s419_s13 = scalar_lea.hbm %s498_s1, 3072  ;;  %s16_s10 = int_to_ptr.vmem [resolvable:$true] %s15_s10 }
   0x2   :  { %p420_p0 = scmp.ne.s32.totalorder %s498_s1, %s419_s13  ;;  %p423_p1 = scmp.lt.u32.totalorder %s419_s13, %s498_s1 }
   0x4   :  { %p425_p2 = pnand %p423_p1, %p420_p0 }
   0x6   :  { %428 = shalt.err (!%p425_p2)
}
   0x7   :  { %s429_s18 = scalar_lea.vmem %s16_s10, 3072  ;;  %p434_p4 = scmp.lt.s32.totalorder %s16_s10, %s16_s10 }
   0x8   :  { %p430_p3 = scmp.ne.s32.totalorder %s16_s10, %s429_s18  ;;  %p435_p5 = scmp.lt.s32.totalorder %s429_s18, %s429_s18 }
   0xa   :  { %p436_p6 = por %p435_p5, %p434_p4 }
   0xc   :  { %p437_p7 = pnand %p436_p6, %p430_p3 }
   0xe   :  { %440 = shalt.err (!%p437_p7)
}
   0xf   :  { %s444_s19 = smov 192   ;;  %s445_s20 = smov 12  }
  0x10   :  { %21 = dma.hbm_to_vmem [thread:$0]  %s498_s1, 3072, %s16_s10, [#allocation4], %s444_s19, %s444_s19, %s445_s20  }
  0x11   :  { %441 = dma.done.wait [#allocation4], 3072  }
  0x12   :  { %442 = vsyncadd [#allocation4], 4294964224  ;;  %v446_v0 = vmov 0.0   ;;  %vm447_vm0 = vmmov 0   ;;  %v448_v1 = vmov 0   ;;  %v418_v26 = vld [vmem:[%s497_s0] sm:$0xff]  }
  0x13   :  { %360 = vmatprep.subr.bf16.mxu1 %v446_v0  ;;  %376 = vmatprep.mubr.msk.bf16.mxu1 %vm447_vm0, %v446_v0  ;;  %v386_v2 = vld [vmem:[#allocation3 + $0x4] ss:$12 sps:$4 sm:$0xff]   ;;  %v388_v3 = vld [vmem:[#allocation3 + $0x8] ss:$12 sps:$4 sm:$0xff]   ;;  %v389_v4 = vld [vmem:[#allocation3] ss:$12 sps:$4 sm:$0xff]  }
  0x14   :  { %242 = vmatprep.mubr.bf16.mxu0 %v448_v1  ;;  %210 = vmatprep.subr.bf16.mxu0 %v386_v2  ;;  %v390_v5 = vld [vmem:[#allocation3 + $0x1c] ss:$12 sps:$4 sm:$0xff]   ;;  %v392_v6 = vld [vmem:[#allocation3 + $0x20] ss:$12 sps:$4 sm:$0xff]   ;;  %v393_v7 = vld [vmem:[#allocation3 + $0x18] ss:$12 sps:$4 sm:$0xff]  }
  0x15   :  { %361 = vmatpush3.bf16.msra.mxu1 %v388_v3  ;;  %211 = vmatpush1.bf16.msra.mxu0 %v389_v4  ;;  %v394_v8 = vld [vmem:[#allocation3 + $0x34] ss:$12 sps:$4 sm:$0xff]   ;;  %v396_v9 = vld [vmem:[#allocation3 + $0x38] ss:$12 sps:$4 sm:$0xff]   ;;  %v397_v10 = vld [vmem:[#allocation3 + $0x30] ss:$12 sps:$4 sm:$0xff]  }
  0x16   :  { %362 = vmatprep.subr.bf16.mxu1 %v446_v0  ;;  %212 = vmatprep.subr.bf16.mxu0 %v390_v5  ;;  %v398_v11 = vld [vmem:[#allocation3 + $0x4c] ss:$12 sps:$4 sm:$0xff]   ;;  %v400_v12 = vld [vmem:[#allocation3 + $0x50] ss:$12 sps:$4 sm:$0xff]   ;;  %v401_v13 = vld [vmem:[#allocation3 + $0x48] ss:$12 sps:$4 sm:$0xff]  }
  0x17   :  { %v402_v14 = vld [vmem:[#allocation3 + $0x64] ss:$12 sps:$4 sm:$0xff]   ;;  %v404_v15 = vld [vmem:[#allocation3 + $0x68] ss:$12 sps:$4 sm:$0xff]   ;;  %v405_v16 = vld [vmem:[#allocation3 + $0x60] ss:$12 sps:$4 sm:$0xff]  }
  0x18   :  { %v406_v17 = vld [vmem:[#allocation3 + $0x7c] ss:$12 sps:$4 sm:$0xff]   ;;  %v408_v18 = vld [vmem:[#allocation3 + $0x80] ss:$12 sps:$4 sm:$0xff]   ;;  %v409_v19 = vld [vmem:[#allocation3 + $0x78] ss:$12 sps:$4 sm:$0xff]  }
  0x19   :  { %363 = vmatpush3.bf16.msra.mxu1 %v392_v6  ;;  %213 = vmatpush1.bf16.msra.mxu0 %v393_v7  ;;  %v410_v20 = vld [vmem:[#allocation3 + $0x94] ss:$12 sps:$4 sm:$0xff]   ;;  %v412_v21 = vld [vmem:[#allocation3 + $0x98] ss:$12 sps:$4 sm:$0xff]   ;;  %v413_v22 = vld [vmem:[#allocation3 + $0x90] ss:$12 sps:$4 sm:$0xff]  }
  0x1a   :  { %364 = vmatprep.subr.bf16.mxu1 %v446_v0  ;;  %214 = vmatprep.subr.bf16.mxu0 %v394_v8  ;;  %v414_v23 = vld [vmem:[#allocation3 + $0xac] ss:$12 sps:$4 sm:$0xff]   ;;  %v416_v24 = vld [vmem:[#allocation3 + $0xb0] ss:$12 sps:$4 sm:$0xff]   ;;  %v417_v25 = vld [vmem:[#allocation3 + $0xa8] ss:$12 sps:$4 sm:$0xff]  }
  0x1d   :  { %365 = vmatpush3.bf16.msra.mxu1 %v396_v9  ;;  %215 = vmatpush1.bf16.msra.mxu0 %v397_v10 }
  0x1e   :  { %366 = vmatprep.subr.bf16.mxu1 %v446_v0  ;;  %216 = vmatprep.subr.bf16.mxu0 %v398_v11 }
  0x21   :  { %367 = vmatpush3.bf16.msra.mxu1 %v400_v12  ;;  %217 = vmatpush1.bf16.msra.mxu0 %v401_v13 }
  0x22   :  { %368 = vmatprep.subr.bf16.mxu1 %v446_v0  ;;  %218 = vmatprep.subr.bf16.mxu0 %v402_v14 }
  0x25   :  { %369 = vmatpush3.bf16.msra.mxu1 %v404_v15  ;;  %219 = vmatpush1.bf16.msra.mxu0 %v405_v16 }
  0x26   :  { %370 = vmatprep.subr.bf16.mxu1 %v446_v0  ;;  %220 = vmatprep.subr.bf16.mxu0 %v406_v17 }
  0x29   :  { %371 = vmatpush3.bf16.msra.mxu1 %v408_v18  ;;  %221 = vmatpush1.bf16.msra.mxu0 %v409_v19 }
  0x2a   :  { %372 = vmatprep.subr.bf16.mxu1 %v446_v0  ;;  %222 = vmatprep.subr.bf16.mxu0 %v410_v20 }
  0x2d   :  { %373 = vmatpush3.bf16.msra.mxu1 %v412_v21  ;;  %223 = vmatpush1.bf16.msra.mxu0 %v413_v22 }
  0x2e   :  { %374 = vmatprep.subr.bf16.mxu1 %v446_v0  ;;  %224 = vmatprep.subr.bf16.mxu0 %v414_v23 }
  0x31   :  { %375 = vmatpush3.bf16.msra.mxu1 %v416_v24  ;;  %225 = vmatpush1.bf16.msra.mxu0 %v417_v25 }
  0x34   :  { %377 = vmatmul.mubr.bf16.vlgmr.msra.gmra.mrb[0].mxu1 %v418_v26  ;;  %243 = vmatmul.mubr.bf16.vlgmr.msra.gmra.mrb[0].mxu0 %v418_v26 }
 0x107   :  { %v287_v27 = vpop.f32.mrb[0].mxu1  ;;  %v244_v28 = vpop.f32.mrb[0].mxu0 }
 0x108   :  { %317 = vst [vmem:[%s499_s2 + $0x10] sm:$0xff] %v287_v27  ;;  %v378_v29 = vpop.f32.mrb[1].mxu1  ;;  %315 = vst [vmem:[%s499_s2] sm:$0xff] %v244_v28  ;;  %v246_v30 = vpop.f32.mrb[1].mxu0 }
 0x109   :  { %v290_v31 = vpop.f32.mrb[2].mxu1  ;;  %316 = vst [vmem:[%s499_s2 + $0x8] sm:$0xff] %v246_v30  ;;  %v248_v32 = vpop.f32.mrb[2].mxu0 }
 0x10a   :  { %320 = vst [vmem:[%s499_s2 + $0x28] sm:$0xff] %v290_v31  ;;  %v379_v33 = vpop.f32.mrb[3].mxu1  ;;  %318 = vst [vmem:[%s499_s2 + $0x18] sm:$0xff] %v248_v32  ;;  %v250_v34 = vpop.f32.mrb[3].mxu0 }
 0x10b   :  { %319 = vst [vmem:[%s499_s2 + $0x20] sm:$0xff] %v250_v34 }
 0x10c   :  { %325 = vsyncpa [#allocation4], 1 }

// kernel: transformer_block.9
= control target key start
LH: loop header
LB: loop body
LE: loop exit
PB: predicated region body
PF: predicated region fallthrough
CT: control target
= control target key end

     0   :  { %v204_v0 = vmov 0.0   ;;  %vm205_vm0 = vmmov 0   ;;  %s265_s1 = inlined_call_operand.vmem [shape: bf16[128,128], index: 1, kind: input, shape index: {}]   ;;  %s266_s0 = inlined_call_operand.vmem [shape: bf16[16,128], index: 0, kind: input, shape index: {}]   ;;  %s267_s2 = inlined_call_operand.vmem [shape: f32[16,128], index: 2, kind: input, shape index: {}]   ;;  %s268_s3 = inlined_call_operand.vmem [shape: f32[16,128], index: 3, kind: output, shape index: {}]  }
   0x1   :  { %173 = vmatprep.subr.bf16.mxu0 %v204_v0  ;;  %v195_v1 = vld [vmem:[%s265_s1] sm:$0xff]   ;;  %189 = vmatprep.mubr.msk.bf16.mxu0 %vm205_vm0, %v204_v0  ;;  %v196_v2 = vld [vmem:[%s265_s1 + $0x8] sm:$0xff]   ;;  %v197_v3 = vld [vmem:[%s265_s1 + $0x10] sm:$0xff]  }
   0x2   :  { %174 = vmatpush3.bf16.msra.mxu0 %v195_v1  ;;  %v198_v4 = vld [vmem:[%s265_s1 + $0x18] sm:$0xff]   ;;  %v199_v5 = vld [vmem:[%s265_s1 + $0x20] sm:$0xff]   ;;  %v200_v6 = vld [vmem:[%s265_s1 + $0x28] sm:$0xff]  }
   0x3   :  { %175 = vmatprep.subr.bf16.mxu0 %v204_v0  ;;  %v201_v7 = vld [vmem:[%s265_s1 + $0x30] sm:$0xff]   ;;  %v202_v8 = vld [vmem:[%s265_s1 + $0x38] sm:$0xff]   ;;  %v203_v9 = vld [vmem:[%s266_s0] sm:$0xff]  }
   0x4   :  { %v145_v10 = vld [vmem:[%s267_s2] sm:$0xff]  ;;  %v146_v12 = vld [vmem:[%s267_s2 + $0x8] sm:$0xff] }
   0x6   :  { %176 = vmatpush3.bf16.msra.mxu0 %v196_v2 }
   0x7   :  { %177 = vmatprep.subr.bf16.mxu0 %v204_v0 }
   0xa   :  { %178 = vmatpush3.bf16.msra.mxu0 %v197_v3 }
   0xb   :  { %179 = vmatprep.subr.bf16.mxu0 %v204_v0 }
   0xe   :  { %180 = vmatpush3.bf16.msra.mxu0 %v198_v4 }
   0xf   :  { %181 = vmatprep.subr.bf16.mxu0 %v204_v0 }
  0x12   :  { %182 = vmatpush3.bf16.msra.mxu0 %v199_v5 }
  0x13   :  { %183 = vmatprep.subr.bf16.mxu0 %v204_v0 }
  0x16   :  { %184 = vmatpush3.bf16.msra.mxu0 %v200_v6 }
  0x17   :  { %185 = vmatprep.subr.bf16.mxu0 %v204_v0 }
  0x1a   :  { %186 = vmatpush3.bf16.msra.mxu0 %v201_v7 }
  0x1b   :  { %187 = vmatprep.subr.bf16.mxu0 %v204_v0 }
  0x1e   :  { %188 = vmatpush3.bf16.msra.mxu0 %v202_v8 }
  0x21   :  { %190 = vmatmul.mubr.bf16.vlgmr.msra.gmra.mrb[0].mxu0 %v203_v9 }
  0xf4   :  { %v129_v11 = vpop.f32.mrb[0].mxu0 }
  0xf5   :  { %v147_v13 = vadd.f32 %v145_v10, %v129_v11  ;;  %v191_v14 = vpop.f32.mrb[1].mxu0 }
  0xf6   :  { %v132_v15 = vpop.f32.mrb[2].mxu0 }
  0xf7   :  { %149 = vst [vmem:[%s268_s3] sm:$0xff] %v147_v13  ;;  %v148_v16 = vadd.f32 %v146_v12, %v132_v15  ;;  %v192_v17 = vpop.f32.mrb[3].mxu0 }
  0xf9   :  { %150 = vst [vmem:[%s268_s3 + $0x8] sm:$0xff] %v148_v16 }

// kernel: transformer_block.8
= control target key start
LH: loop header
LB: loop body
LE: loop exit
PB: predicated region body
PF: predicated region fallthrough
CT: control target
= control target key end

     0   :  { %s907_s12 = smov 0   ;;  %s1023_s0 = inlined_call_operand.vmem [shape: bf16[2,8,128], index: 0, kind: input, shape index: {}]   ;;  %s1024_s1 = inlined_call_operand.vmem [shape: bf16[2,8,128], index: 1, kind: input, shape index: {}]   ;;  %s1025_s2 = inlined_call_operand.vmem [shape: bf16[2,8,128], index: 2, kind: input, shape index: {}]   ;;  %s1026_s3 = inlined_call_operand.vmem [shape: bf16[2,8,128], index: 3, kind: output, shape index: {}]  }
   0x1 LB: > { %s757_s13 = sadd.s32 4294967295, %s880_s12   ;;  %p761_p0 = scmp.ge.s32.totalorder %s880_s12, 1  ;;  %s880_s12 = sphi %s907_s12, %s13_s12  }
   0x2   : > { %p154_p1 = scmp.lt.s32.totalorder %s880_s12, 3 }
   0x4   : > { %p155_p2 = pnand %p761_p0, %p154_p1 }
   0x5   : > { %p184_p3 = scmp.lt.s32.totalorder (!%p155_p2), %s757_s13, 1  ;;  %v882_v0 = vmov (!%p155_p2), 0.0   ;;  %vm883_vm0 = vmmov (!%p155_p2), 0   ;;  %vm211_vm1 = vcmask (!%p155_p2), 261120   ;;  %v202_v5 = vlaneseq (!%p155_p2)  ;;  %s884_s21 = smov (!%p155_p2), 96  }
   0x6   : > { %158 = sbr.rel (%p155_p2) target bundleno = 1475 (0x5c3), region = 32  ;;  %795 = vmatprep.subr.bf16.mxu0 (!%p155_p2), %v882_v0  ;;  %797 = vmatprep.mubr.msk.bf16.mxu0 (!%p155_p2), %vm883_vm0, %v882_v0  ;;  %vm259_vm3 = vcmask (!%p155_p2), 64512   ;;  %s885_s22 = smov (!%p155_p2), 64   ;;  %vm275_vm4 = vcmask (!%p155_p2), 1043456   ;;  %vm674_vm5 = vcmask (!%p155_p2), 523264   ;;  %vm676_vm6 = vcmask (!%p155_p2), 785408  }
   0x7   : > { %801 = vmatprep.subr.bf16.mxu1 (!%p155_p2), %v882_v0  ;;  %803 = vmatprep.mubr.msk.bf16.mxu1 (!%p155_p2), %vm883_vm0, %v882_v0  ;;  %v936_v6 = vshrl.u32 (!%p155_p2), %v202_v5, 7  ;;  %v938_v7 = vand.u32 (!%p155_p2), 127, %v202_v5  ;;  %s886_s23 = smov (!%p155_p2), 32  }
   0x9   : > { %vm206_vm2 = vcmp.le.s32.totalorder (!%p155_p2), %v938_v7, %v936_v6 }
   0xd   : > { %s1028_s13 = smov (!%p184_p3, %s757_s13), 1 }
   0xe   : > { %s921_s14 = sshll.u32 %s1028_s13, 2 }
   0xf   : > { %s191_s17 = scalar_lea.vmem %s1024_s1, %s921_s14  ;;  %s187_s20 = scalar_lea.vmem %s1023_s0, %s921_s14 }
  0x10   : > { %v208_v1 = vld [vmem:[%s191_s17] sm:$0xf]  ;;  %s195_s26 = scalar_lea.vmem %s1025_s2, %s921_s14  ;;  %s199_s29 = scalar_lea.vmem %s1026_s3, %s921_s14 }
  0x11   : > { %v216_v2 = vsel %vm211_vm1, %v208_v1, 0  ;;  %v207_v3 = vld [vmem:[%s187_s20] sm:$0xf]  ;;  %v769_v14 = vcombine.low %v208_v1, %v208_v1 }
  0x12   : > { %796 = vmatpush3.bf16.xpose.msra.mxu0 %v216_v2  ;;  %v210_v4 = vmul.bf16 1043676725, %v207_v3  ;;  %v956_v21 = vld [vmem:[%s195_s26] sm:$0xf] }
  0x13   : > { %813 = vmatprep.subr.bf16.mxu0 %v882_v0  ;;  %327 = vrot.lane.b32.xlu1 %v769_v14, %s884_s21  ;;  %v277_v22 = vsel %vm275_vm4, %v956_v21, 0  ;;  %v771_v5 = vcombine.low %v956_v21, %v956_v21 }
  0x14   : > { %v768_v15 = vcombine.low %v210_v4, %v210_v4  ;;  %802 = vmatpush3.bf16.msra.mxu1 %v277_v22 }
  0x15   : > { %807 = vmatprep.subr.bf16.mxu1 %v882_v0 }
  0x17   : > { %322 = vrot.lane.b32.xlu1 %v768_v15, %s884_s21 }
  0x19   : > { %798 = vmatmul.mubr.msk.bf16.vlgmr.msra.gmra.mrb[0].mxu0 %vm211_vm1, %v210_v4 }
  0x1a   : > { %815 = vmatprep.mubr.msk.bf16.mxu0 %vm883_vm0, %v882_v0 }
  0x1b   : > { %439 = vrot.lane.b32.xlu1 %v768_v15, %s885_s22 }
  0x1f   : > { %552 = vrot.lane.b32.xlu1 %v769_v14, %s886_s23 }
  0x23   : > { %550 = vrot.lane.b32.xlu1 %v768_v15, %s886_s23 }
  0x85   : > { %v328_v25 = vpop.permute.xlu1 %327 }
  0x86   : > { %v333_v27 = vsel %vm211_vm1, %v328_v25, 0 }
  0x89   : > { %v323_v29 = vpop.permute.xlu1 %322 }
  0x8d   : > { %v440_v31 = vpop.permute.xlu1 %439 }
  0x91   : > { %v553_v33 = vpop.permute.xlu1 %552 }
  0x92   : > { %v558_v34 = vsel %vm211_vm1, %v553_v33, 0 }
  0x95   : > { %v551_v35 = vpop.permute.xlu1 %550 }
  0xec   : > { %v252_v8 = vpop.f32.mrb[0].mxu0 }
  0xed   : > { %v258_v9 = vsel %vm206_vm2, %v252_v8, -3.4028235e+38  ;;  %v799_v10 = vpop.f32.mrb[1].mxu0 }
  0xee   : > { %v255_v11 = vpop.f32.mrb[2].mxu0  ;;  %v260_v12 = vsel %vm259_vm3, %v258_v9, -inf }
  0xef   : > { %261 = vmax.xlane.f32.xlu0 %v260_v12  ;;  %v800_v13 = vpop.f32.mrb[3].mxu0 }
 0x17c   : > { %v262_v16 = vpop.xlane.xlu0 %261 }
 0x17d   : > { %v263_v17 = vsub.f32 %v258_v9, %v262_v16 }
 0x17f   : > { %v264_v18 = vmul.f32 1.442695, %v263_v17 }
 0x181   : > { %858 = vpow2.f32 %v264_v18 }
 0x18b   : > { %v859_v19 = vpop.eup %858 }
 0x18c   : > { %v266_v20 = vsel %vm259_vm3, %v859_v19, 0.0 }
 0x18d   : > { %267 = vadd.xlane.f32.xlu0 %v266_v20 }
 0x1a3   : > { %441 = vrot.lane.b32.xlu0 %v769_v14, %s885_s22 }
 0x21a   : > { %v268_v23 = vpop.xlane.xlu0 %267 }
 0x21b   : > { %860 = vrcp.f32 %v268_v23 }
 0x21e   : > { %v442_v30 = vpop.permute.xlu0 %441 }
 0x21f   : > { %v447_v32 = vsel %vm211_vm1, %v442_v30, 0 }
 0x225   : > { %v861_v24 = vpop.eup %860 }
 0x226   : > { %v270_v26 = vmul.f32 %v861_v24, %v859_v19 }
 0x228   : > { %v271_v28 = vpack.c.bf16 %v270_v26, %v270_v26 }
 0x22a   : > { %804 = vmatmul.mubr.msk.bf16.vlgmr.msra.gmra.mrb[0].mxu1 %vm259_vm3, %v271_v28 }
 0x22b   : > { %808 = vmatpush3.bf16.xpose.msra.mxu1 %v333_v27  ;;  %809 = vmatprep.mubr.msk.bf16.mxu1 %vm883_vm0, %v882_v0 }
 0x22c   : > { %819 = vmatprep.subr.bf16.mxu1 %v882_v0 }
 0x232   : > { %810 = vmatmul.mubr.msk.bf16.vlgmr.msra.gmra.mrb[4].mxu1 %vm211_vm1, %v323_v29 }
 0x233   : > { %820 = vmatpush3.bf16.xpose.msra.mxu1 %v447_v32  ;;  %821 = vmatprep.mubr.msk.bf16.mxu1 %vm883_vm0, %v882_v0 }
 0x234   : > { %831 = vmatprep.subr.bf16.mxu1 %v882_v0 }
 0x23a   : > { %822 = vmatmul.mubr.msk.bf16.vlgmr.msra.gmra.mrb[8].mxu1 %vm211_vm1, %v440_v31 }
 0x23b   : > { %832 = vmatpush3.bf16.xpose.msra.mxu1 %v558_v34  ;;  %833 = vmatprep.mubr.msk.bf16.mxu1 %vm883_vm0, %v882_v0 }
 0x242   : > { %834 = vmatmul.mubr.msk.bf16.vlgmr.msra.gmra.mrb[12].mxu1 %vm211_vm1, %v551_v35 }
 0x2fd   : > { %v977_v36 = vpop.f32.mrb[0].mxu1 }
 0x2fe   : > { %v805_v37 = vpop.f32.mrb[1].mxu1 }
 0x2ff   : > { %v316_v38 = vpop.f32.mrb[2].mxu1 }
 0x300   : > { %v806_v39 = vpop.f32.mrb[3].mxu1 }
 0x305   : > { %v369_v40 = vpop.f32.mrb[4].mxu1 }
 0x306   : > { %v375_v41 = vsel %vm206_vm2, %v369_v40, -3.4028235e+38  ;;  %v811_v42 = vpop.f32.mrb[5].mxu1 }
 0x307   : > { %v372_v43 = vpop.f32.mrb[6].mxu1  ;;  %v376_v44 = vsel %vm259_vm3, %v375_v41, -inf }
 0x308   : > { %377 = vmax.xlane.f32.xlu1 %v376_v44  ;;  %v812_v45 = vpop.f32.mrb[7].mxu1 }
 0x30d   : > { %v483_v46 = vpop.f32.mrb[8].mxu1 }
 0x30e   : > { %v489_v47 = vsel %vm206_vm2, %v483_v46, -3.4028235e+38  ;;  %v823_v48 = vpop.f32.mrb[9].mxu1 }
 0x30f   : > { %v490_v49 = vsel %vm259_vm3, %v489_v47, -inf  ;;  %v486_v50 = vpop.f32.mrb[10].mxu1 }
 0x310   : > { %491 = vmax.xlane.f32.xlu0 %v490_v49  ;;  %v824_v51 = vpop.f32.mrb[11].mxu1 }
 0x315   : > { %v594_v52 = vpop.f32.mrb[12].mxu1 }
 0x316   : > { %v600_v53 = vsel %vm206_vm2, %v594_v52, -3.4028235e+38  ;;  %v835_v54 = vpop.f32.mrb[13].mxu1 }
 0x317   : > { %v601_v55 = vsel %vm259_vm3, %v600_v53, -inf  ;;  %v597_v56 = vpop.f32.mrb[14].mxu1 }
 0x318   : > { %602 = vmax.xlane.f32.xlu1 %v601_v55  ;;  %v836_v57 = vpop.f32.mrb[15].mxu1 }
 0x395   : > { %v378_v58 = vpop.xlane.xlu1 %377 }
 0x396   : > { %v379_v59 = vsub.f32 %v375_v41, %v378_v58 }
 0x398   : > { %v380_v60 = vmul.f32 1.442695, %v379_v59 }
 0x39a   : > { %862 = vpow2.f32 %v380_v60 }
 0x39d   : > { %v492_v61 = vpop.xlane.xlu0 %491 }
 0x39e   : > { %v493_v62 = vsub.f32 %v489_v47, %v492_v61 }
 0x3a0   : > { %v494_v63 = vmul.f32 1.442695, %v493_v62 }
 0x3a2   : > { %864 = vpow2.f32 %v494_v63 }
 0x3a4   : > { %v863_v1 = vpop.eup %862 }
 0x3a5   : > { %v382_v2 = vsel %vm259_vm3, %v863_v1, 0.0  ;;  %v603_v6 = vpop.xlane.xlu1 %602 }
 0x3a6   : > { %383 = vadd.xlane.f32.xlu1 %v382_v2  ;;  %v604_v7 = vsub.f32 %v600_v53, %v603_v6 }
 0x3a8   : > { %v605_v8 = vmul.f32 1.442695, %v604_v7 }
 0x3aa   : > { %866 = vpow2.f32 %v605_v8 }
 0x3ac   : > { %v865_v3 = vpop.eup %864 }
 0x3ad   : > { %v496_v4 = vsel %vm259_vm3, %v865_v3, 0.0 }
 0x3ae   : > { %497 = vadd.xlane.f32.xlu0 %v496_v4 }
 0x3b4   : > { %v867_v9 = vpop.eup %866 }
 0x3b5   : > { %v607_v10 = vsel %vm259_vm3, %v867_v9, 0.0 }
 0x3b7   : > { %502 = vrot.lane.b32.xlu1 %v771_v5, %s885_s22 }
 0x3c4   : > { %391 = vrot.lane.b32.xlu0 %v771_v5, %s884_s21 }
 0x3db   : > { %608 = vadd.xlane.f32.xlu1 %v607_v10 }
 0x3ec   : > { %613 = vrot.lane.b32.xlu1 %v771_v5, %s886_s23 }
 0x433   : > { %v384_v11 = vpop.xlane.xlu1 %383 }
 0x434   : > { %868 = vrcp.f32 %v384_v11 }
 0x437   : > { %v503_v17 = vpop.permute.xlu1 %502 }
 0x438   : > { %v508_v19 = vsel %vm275_vm4, %v503_v17, 0 }
 0x43b   : > { %v498_v12 = vpop.xlane.xlu0 %497 }
 0x43c   : > { %870 = vrcp.f32 %v498_v12 }
 0x43e   : > { %v869_v13 = vpop.eup %868 }
 0x43f   : > { %v386_v14 = vmul.f32 %v869_v13, %v863_v1  ;;  %v392_v15 = vpop.permute.xlu0 %391 }
 0x440   : > { %v397_v16 = vsel %vm275_vm4, %v392_v15, 0 }
 0x441   : > { %814 = vmatpush3.bf16.msra.mxu0 %v397_v16  ;;  %v387_v18 = vpack.c.bf16 %v386_v14, %v386_v14 }
 0x442   : > { %825 = vmatprep.subr.bf16.mxu0 %v882_v0 }
 0x444   : > { %816 = vmatmul.mubr.msk.bf16.vlgmr.msra.gmra.mrb[4].mxu0 %vm259_vm3, %v387_v18 }
 0x445   : > { %826 = vmatpush3.bf16.msra.mxu0 %v508_v19  ;;  %827 = vmatprep.mubr.msk.bf16.mxu0 %vm883_vm0, %v882_v0 }
 0x446   : > { %v871_v20 = vpop.eup %870  ;;  %837 = vmatprep.subr.bf16.mxu0 %v882_v0 }
 0x447   : > { %v500_v21 = vmul.f32 %v871_v20, %v865_v3 }
 0x449   : > { %v501_v22 = vpack.c.bf16 %v500_v21, %v500_v21 }
 0x44c   : > { %828 = vmatmul.mubr.msk.bf16.vlgmr.msra.gmra.mrb[8].mxu0 %vm259_vm3, %v501_v22 }
 0x44d   : > { %839 = vmatprep.mubr.msk.bf16.mxu0 %vm883_vm0, %v882_v0 }
 0x468   : > { %v609_v23 = vpop.xlane.xlu1 %608 }
 0x469   : > { %872 = vrcp.f32 %v609_v23 }
 0x46c   : > { %v614_v24 = vpop.permute.xlu1 %613 }
 0x46d   : > { %v619_v25 = vsel %vm275_vm4, %v614_v24, 0 }
 0x46e   : > { %838 = vmatpush3.bf16.msra.mxu0 %v619_v25 }
 0x473   : > { %v873_v26 = vpop.eup %872 }
 0x474   : > { %v611_v27 = vmul.f32 %v873_v26, %v867_v9 }
 0x476   : > { %v612_v28 = vpack.c.bf16 %v611_v27, %v611_v27 }
 0x478   : > { %840 = vmatmul.mubr.msk.bf16.vlgmr.msra.gmra.mrb[12].mxu0 %vm259_vm3, %v612_v28 }
 0x517   : > { %v433_v29 = vpop.f32.mrb[4].mxu0 }
 0x518   : > { %662 = vrot.lane.b32.xlu0 %v433_v29, %s886_s23  ;;  %v817_v30 = vpop.f32.mrb[5].mxu0 }
 0x519   : > { %v436_v31 = vpop.f32.mrb[6].mxu0 }
 0x51a   : > { %v818_v32 = vpop.f32.mrb[7].mxu0 }
 0x51f   : > { %v544_v33 = vpop.f32.mrb[8].mxu0 }
 0x520   : > { %666 = vrot.lane.b32.xlu1 %v544_v33, %s885_s22  ;;  %v829_v0 = vpop.f32.mrb[9].mxu0 }
 0x521   : > { %v547_v34 = vpop.f32.mrb[10].mxu0 }
 0x522   : > { %v830_v35 = vpop.f32.mrb[11].mxu0 }
 0x54b   : > { %v655_v37 = vpop.f32.mrb[12].mxu0 }
 0x54c   : > { %670 = vrot.lane.b32.xlu0 %v655_v37, %s884_s21  ;;  %v841_v38 = vpop.f32.mrb[13].mxu0 }
 0x54d   : > { %v658_v39 = vpop.f32.mrb[14].mxu0 }
 0x54e   : > { %v842_v40 = vpop.f32.mrb[15].mxu0 }
 0x58a   : > { %v663_v41 = vpop.permute.xlu0 %662 }
 0x58b   : > { %v673_v43 = vsel %vm211_vm1, %v977_v36, %v663_v41 }
 0x592   : > { %v667_v42 = vpop.permute.xlu1 %666 }
 0x593   : > { %v675_v44 = vsel %vm674_vm5, %v673_v43, %v667_v42 }
 0x5be   : > { %v671_v45 = vpop.permute.xlu0 %670 }
 0x5bf   : > { %v677_v46 = vsel %vm676_vm6, %v675_v44, %v671_v45 }
 0x5c0   : > { %v678_v47 = vpack.c.bf16 %v677_v46, %v677_v46 }
 0x5c2   : > { %679 = vst [vmem:[%s199_s29] sm:$0xf] %v678_v47 }
 0x5c3 PF: > { %s13_s12 = sadd.s32 1, %s880_s12  }
 0x5c4   : > { %p10_p4 = scmp.ge.s32.totalorder %s13_s12, 4  }
 0x5c6   :  { %12 = sbr.rel (!%p10_p4) target bundleno = 1 (0x1), region = 68 }

// kernel: transformer_block.11
= control target key start
LH: loop header
LB: loop body
LE: loop exit
PB: predicated region body
PF: predicated region fallthrough
CT: control target
= control target key end

     0   :  { %v1369_v2 = vmov 0   ;;  %s1722_s0 = inlined_call_operand.vmem [shape: bf16[16,128], index: 0, kind: input, shape index: {}]   ;;  %s1723_s1 = inlined_call_operand.vmem [shape: bf16[128,512], index: 1, kind: input, shape index: {}]   ;;  %s1724_s2 = inlined_call_operand.vmem [shape: bf16[128,512], index: 2, kind: input, shape index: {}]   ;;  %s1725_s3 = inlined_call_operand.vmem [shape: bf16[512,128], index: 3, kind: input, shape index: {}]   ;;  %s1726_s4 = inlined_call_operand.vmem [shape: f32[16,128], index: 4, kind: input, shape index: {}]   ;;  %s1727_s5 = inlined_call_operand.hbm [shape: f32[16,128], index: 5, kind: output, shape index: {}]  }
   0x1   :  { %v1184_v0 = vld [vmem:[%s1723_s1 + $0x4] ss:$16 sps:$4 sm:$0xff]   ;;  %v1186_v1 = vld [vmem:[%s1723_s1 + $0xc] ss:$16 sps:$4 sm:$0xff]   ;;  %260 = vmatprep.mubr.bf16.mxu0 %v1369_v2  ;;  %303 = vmatprep.mubr.bf16.mxu1 %v1369_v2  ;;  %v1188_v3 = vld [vmem:[%s1723_s1] ss:$16 sps:$4 sm:$0xff]  }
   0x2   :  { %228 = vmatprep.subr.bf16.mxu0 %v1184_v0  ;;  %v1189_v4 = vld [vmem:[%s1723_s1 + $0x8] ss:$16 sps:$4 sm:$0xff]   ;;  %271 = vmatprep.subr.bf16.mxu1 %v1186_v1  ;;  %v1190_v5 = vld [vmem:[%s1723_s1 + $0x24] ss:$16 sps:$4 sm:$0xff]   ;;  %v1192_v6 = vld [vmem:[%s1723_s1 + $0x2c] ss:$16 sps:$4 sm:$0xff]  }
   0x3   :  { %229 = vmatpush1.bf16.msra.mxu0 %v1188_v3  ;;  %272 = vmatpush1.bf16.msra.mxu1 %v1189_v4  ;;  %v1194_v7 = vld [vmem:[%s1723_s1 + $0x20] ss:$16 sps:$4 sm:$0xff]   ;;  %v1195_v8 = vld [vmem:[%s1723_s1 + $0x28] ss:$16 sps:$4 sm:$0xff]   ;;  %v1196_v9 = vld [vmem:[%s1723_s1 + $0x44] ss:$16 sps:$4 sm:$0xff]  }
   0x4   :  { %230 = vmatprep.subr.bf16.mxu0 %v1190_v5  ;;  %273 = vmatprep.subr.bf16.mxu1 %v1192_v6  ;;  %v1198_v10 = vld [vmem:[%s1723_s1 + $0x4c] ss:$16 sps:$4 sm:$0xff]   ;;  %v1200_v11 = vld [vmem:[%s1723_s1 + $0x40] ss:$16 sps:$4 sm:$0xff]   ;;  %v1201_v12 = vld [vmem:[%s1723_s1 + $0x48] ss:$16 sps:$4 sm:$0xff]  }
   0x5   :  { %v1202_v13 = vld [vmem:[%s1723_s1 + $0x64] ss:$16 sps:$4 sm:$0xff]   ;;  %v1204_v14 = vld [vmem:[%s1723_s1 + $0x6c] ss:$16 sps:$4 sm:$0xff]   ;;  %v1206_v15 = vld [vmem:[%s1723_s1 + $0x60] ss:$16 sps:$4 sm:$0xff]  }
   0x6   :  { %v1207_v16 = vld [vmem:[%s1723_s1 + $0x68] ss:$16 sps:$4 sm:$0xff]   ;;  %v1208_v17 = vld [vmem:[%s1723_s1 + $0x84] ss:$16 sps:$4 sm:$0xff]   ;;  %v1210_v18 = vld [vmem:[%s1723_s1 + $0x8c] ss:$16 sps:$4 sm:$0xff]  }
   0x7   :  { %231 = vmatpush1.bf16.msra.mxu0 %v1194_v7  ;;  %274 = vmatpush1.bf16.msra.mxu1 %v1195_v8  ;;  %v1212_v19 = vld [vmem:[%s1723_s1 + $0x80] ss:$16 sps:$4 sm:$0xff]   ;;  %v1213_v20 = vld [vmem:[%s1723_s1 + $0x88] ss:$16 sps:$4 sm:$0xff]   ;;  %v1214_v21 = vld [vmem:[%s1723_s1 + $0xa4] ss:$16 sps:$4 sm:$0xff]  }
   0x8   :  { %232 = vmatprep.subr.bf16.mxu0 %v1196_v9  ;;  %275 = vmatprep.subr.bf16.mxu1 %v1198_v10  ;;  %v1216_v22 = vld [vmem:[%s1723_s1 + $0xac] ss:$16 sps:$4 sm:$0xff]   ;;  %v1218_v23 = vld [vmem:[%s1723_s1 + $0xa0] ss:$16 sps:$4 sm:$0xff]   ;;  %v1219_v24 = vld [vmem:[%s1723_s1 + $0xa8] ss:$16 sps:$4 sm:$0xff]  }
   0x9   :  { %v1220_v25 = vld [vmem:[%s1723_s1 + $0xc4] ss:$16 sps:$4 sm:$0xff]   ;;  %v1222_v26 = vld [vmem:[%s1723_s1 + $0xcc] ss:$16 sps:$4 sm:$0xff]   ;;  %v1224_v27 = vld [vmem:[%s1723_s1 + $0xc0] ss:$16 sps:$4 sm:$0xff]  }
   0xa   :  { %v1225_v28 = vld [vmem:[%s1723_s1 + $0xc8] ss:$16 sps:$4 sm:$0xff]   ;;  %v1226_v29 = vld [vmem:[%s1723_s1 + $0xe4] ss:$16 sps:$4 sm:$0xff]   ;;  %v1228_v30 = vld [vmem:[%s1723_s1 + $0xec] ss:$16 sps:$4 sm:$0xff]  }
   0xb   :  { %233 = vmatpush1.bf16.msra.mxu0 %v1200_v11  ;;  %276 = vmatpush1.bf16.msra.mxu1 %v1201_v12  ;;  %v1230_v31 = vld [vmem:[%s1723_s1 + $0xe0] ss:$16 sps:$4 sm:$0xff]   ;;  %v1231_v32 = vld [vmem:[%s1723_s1 + $0xe8] ss:$16 sps:$4 sm:$0xff]   ;;  %v1235_v33 = vld [vmem:[%s1724_s2 + $0x4] ss:$16 sps:$4 sm:$0xff]  }
   0xc   :  { %234 = vmatprep.subr.bf16.mxu0 %v1202_v13  ;;  %277 = vmatprep.subr.bf16.mxu1 %v1204_v14  ;;  %v1238_v34 = vld [vmem:[%s1724_s2 + $0xc] ss:$16 sps:$4 sm:$0xff]   ;;  %v1510_v35 = vld [vmem:[%s1722_s0] sm:$0xff]   ;;  %v1236_v37 = vld [vmem:[%s1724_s2 + $0x8] ss:$16 sps:$4 sm:$0xff]  }
   0xd   :  { %v1233_v36 = vld [vmem:[%s1724_s2] ss:$16 sps:$4 sm:$0xff]   ;;  %v1241_v38 = vld [vmem:[%s1724_s2 + $0x24] ss:$16 sps:$4 sm:$0xff]   ;;  %v1244_v39 = vld [vmem:[%s1724_s2 + $0x2c] ss:$16 sps:$4 sm:$0xff]  }
   0xe   :  { %v1239_v40 = vld [vmem:[%s1724_s2 + $0x20] ss:$16 sps:$4 sm:$0xff]   ;;  %v1242_v41 = vld [vmem:[%s1724_s2 + $0x28] ss:$16 sps:$4 sm:$0xff]   ;;  %v1247_v42 = vld [vmem:[%s1724_s2 + $0x44] ss:$16 sps:$4 sm:$0xff]  }
   0xf   :  { %235 = vmatpush1.bf16.msra.mxu0 %v1206_v15  ;;  %278 = vmatpush1.bf16.msra.mxu1 %v1207_v16  ;;  %v1250_v43 = vld [vmem:[%s1724_s2 + $0x4c] ss:$16 sps:$4 sm:$0xff]   ;;  %v1245_v44 = vld [vmem:[%s1724_s2 + $0x40] ss:$16 sps:$4 sm:$0xff]   ;;  %v1248_v45 = vld [vmem:[%s1724_s2 + $0x48] ss:$16 sps:$4 sm:$0xff]  }
  0x10   :  { %236 = vmatprep.subr.bf16.mxu0 %v1208_v17  ;;  %279 = vmatprep.subr.bf16.mxu1 %v1210_v18  ;;  %v1253_v46 = vld [vmem:[%s1724_s2 + $0x64] ss:$16 sps:$4 sm:$0xff]   ;;  %v1256_v47 = vld [vmem:[%s1724_s2 + $0x6c] ss:$16 sps:$4 sm:$0xff]   ;;  %v1251_v48 = vld [vmem:[%s1724_s2 + $0x60] ss:$16 sps:$4 sm:$0xff]  }
  0x11   :  { %v1254_v49 = vld [vmem:[%s1724_s2 + $0x68] ss:$16 sps:$4 sm:$0xff]   ;;  %v1259_v50 = vld [vmem:[%s1724_s2 + $0x84] ss:$16 sps:$4 sm:$0xff]   ;;  %v1262_v51 = vld [vmem:[%s1724_s2 + $0x8c] ss:$16 sps:$4 sm:$0xff]  }
  0x12   :  { %v1257_v52 = vld [vmem:[%s1724_s2 + $0x80] ss:$16 sps:$4 sm:$0xff]   ;;  %v1260_v53 = vld [vmem:[%s1724_s2 + $0x88] ss:$16 sps:$4 sm:$0xff]   ;;  %v1265_v54 = vld [vmem:[%s1724_s2 + $0xa4] ss:$16 sps:$4 sm:$0xff]  }
  0x13   :  { %237 = vmatpush1.bf16.msra.mxu0 %v1212_v19  ;;  %280 = vmatpush1.bf16.msra.mxu1 %v1213_v20  ;;  %v1268_v55 = vld [vmem:[%s1724_s2 + $0xac] ss:$16 sps:$4 sm:$0xff]   ;;  %v1263_v56 = vld [vmem:[%s1724_s2 + $0xa0] ss:$16 sps:$4 sm:$0xff]   ;;  %v1266_v57 = vld [vmem:[%s1724_s2 + $0xa8] ss:$16 sps:$4 sm:$0xff]  }
  0x14   :  { %238 = vmatprep.subr.bf16.mxu0 %v1214_v21  ;;  %281 = vmatprep.subr.bf16.mxu1 %v1216_v22  ;;  %v1271_v58 = vld [vmem:[%s1724_s2 + $0xc4] ss:$16 sps:$4 sm:$0xff]   ;;  %v1274_v59 = vld [vmem:[%s1724_s2 + $0xcc] ss:$16 sps:$4 sm:$0xff]   ;;  %v1269_v60 = vld [vmem:[%s1724_s2 + $0xc0] ss:$16 sps:$4 sm:$0xff]  }
  0x15   :  { %v1272_v61 = vld [vmem:[%s1724_s2 + $0xc8] ss:$16 sps:$4 sm:$0xff]   ;;  %v1277_v62 = vld [vmem:[%s1724_s2 + $0xe4] ss:$16 sps:$4 sm:$0xff]   ;;  %v1280_v63 = vld [vmem:[%s1724_s2 + $0xec] ss:$16 sps:$4 sm:$0xff]  }
  0x16   :  { %v1275_v0 = vld [vmem:[%s1724_s2 + $0xe0] ss:$16 sps:$4 sm:$0xff]   ;;  %v1278_v1 = vld [vmem:[%s1724_s2 + $0xe8] ss:$16 sps:$4 sm:$0xff]  }
  0x17   :  { %239 = vmatpush1.bf16.msra.mxu0 %v1218_v23  ;;  %282 = vmatpush1.bf16.msra.mxu1 %v1219_v24 }
  0x18   :  { %240 = vmatprep.subr.bf16.mxu0 %v1220_v25  ;;  %283 = vmatprep.subr.bf16.mxu1 %v1222_v26 }
  0x1b   :  { %241 = vmatpush1.bf16.msra.mxu0 %v1224_v27  ;;  %284 = vmatpush1.bf16.msra.mxu1 %v1225_v28 }
  0x1c   :  { %242 = vmatprep.subr.bf16.mxu0 %v1226_v29  ;;  %285 = vmatprep.subr.bf16.mxu1 %v1228_v30 }
  0x1f   :  { %243 = vmatpush1.bf16.msra.mxu0 %v1230_v31  ;;  %286 = vmatpush1.bf16.msra.mxu1 %v1231_v32 }
  0x20   :  { %506 = vmatprep.subr.bf16.mxu0 %v1235_v33  ;;  %549 = vmatprep.subr.bf16.mxu1 %v1238_v34 }
  0x22   :  { %261 = vmatmul.mubr.bf16.vlgmr.msra.gmra.mrb[0].mxu0 %v1510_v35  ;;  %304 = vmatmul.mubr.bf16.vlgmr.msra.gmra.mrb[0].mxu1 %v1510_v35 }
  0x23   :  { %507 = vmatpush1.bf16.msra.mxu0 %v1233_v36  ;;  %550 = vmatpush1.bf16.msra.mxu1 %v1236_v37 }
  0x24   :  { %508 = vmatprep.subr.bf16.mxu0 %v1241_v38  ;;  %551 = vmatprep.subr.bf16.mxu1 %v1244_v39 }
  0x25   :  { %538 = vmatprep.mubr.bf16.mxu0 %v1369_v2  ;;  %581 = vmatprep.mubr.bf16.mxu1 %v1369_v2 }
  0x27   :  { %509 = vmatpush1.bf16.msra.mxu0 %v1239_v40  ;;  %552 = vmatpush1.bf16.msra.mxu1 %v1242_v41 }
  0x28   :  { %510 = vmatprep.subr.bf16.mxu0 %v1247_v42  ;;  %553 = vmatprep.subr.bf16.mxu1 %v1250_v43 }
  0x2b   :  { %511 = vmatpush1.bf16.msra.mxu0 %v1245_v44  ;;  %554 = vmatpush1.bf16.msra.mxu1 %v1248_v45 }
  0x2c   :  { %512 = vmatprep.subr.bf16.mxu0 %v1253_v46  ;;  %555 = vmatprep.subr.bf16.mxu1 %v1256_v47 }
  0x2f   :  { %513 = vmatpush1.bf16.msra.mxu0 %v1251_v48  ;;  %556 = vmatpush1.bf16.msra.mxu1 %v1254_v49 }
  0x30   :  { %514 = vmatprep.subr.bf16.mxu0 %v1259_v50  ;;  %557 = vmatprep.subr.bf16.mxu1 %v1262_v51 }
  0x33   :  { %515 = vmatpush1.bf16.msra.mxu0 %v1257_v52  ;;  %558 = vmatpush1.bf16.msra.mxu1 %v1260_v53 }
  0x34   :  { %516 = vmatprep.subr.bf16.mxu0 %v1265_v54  ;;  %559 = vmatprep.subr.bf16.mxu1 %v1268_v55 }
  0x37   :  { %517 = vmatpush1.bf16.msra.mxu0 %v1263_v56  ;;  %560 = vmatpush1.bf16.msra.mxu1 %v1266_v57 }
  0x38   :  { %518 = vmatprep.subr.bf16.mxu0 %v1271_v58  ;;  %561 = vmatprep.subr.bf16.mxu1 %v1274_v59 }
  0x3b   :  { %519 = vmatpush1.bf16.msra.mxu0 %v1269_v60  ;;  %562 = vmatpush1.bf16.msra.mxu1 %v1272_v61 }
  0x3c   :  { %520 = vmatprep.subr.bf16.mxu0 %v1277_v62  ;;  %563 = vmatprep.subr.bf16.mxu1 %v1280_v63 }
  0x3f   :  { %521 = vmatpush1.bf16.msra.mxu0 %v1275_v0  ;;  %564 = vmatpush1.bf16.msra.mxu1 %v1278_v1 }
  0x40   :  { %10 = vsyncpa [#allocation4], 0  ;;  %v1281_v2 = vld [vmem:[%s1725_s3 + $0x40] sm:$0xff]   ;;  %v1285_v6 = vld [vmem:[%s1725_s3 + $0x48] sm:$0xff]   ;;  %s1370_s27 = smov [#allocation3]  }
  0x41   :  { %v1282_v3 = vld [vmem:[%s1725_s3 + $0xc0] sm:$0xff]   ;;  %1136 = vmatprep.subr.bf16.mxu0 %v1281_v2  ;;  %v1286_v7 = vld [vmem:[%s1725_s3 + $0xc8] sm:$0xff]   ;;  %v1289_v10 = vld [vmem:[%s1725_s3 + $0x50] sm:$0xff]   ;;  %s1020_s28 = sshll.u32 %s1370_s27, 4  ;;  %s1021_s28 = int_to_ptr.vmem [resolvable:$true] %s1020_s28 }
  0x42   :  { %539 = vmatmul.mubr.bf16.vlgmr.msra.gmra.mrb[4].mxu0 %v1510_v35  ;;  %582 = vmatmul.mubr.bf16.vlgmr.msra.gmra.mrb[4].mxu1 %v1510_v35  ;;  %v1283_v4 = vld [vmem:[%s1725_s3] sm:$0xff]   ;;  %v1287_v8 = vld [vmem:[%s1725_s3 + $0x8] sm:$0xff]   ;;  %v1290_v11 = vld [vmem:[%s1725_s3 + $0xd0] sm:$0xff]   ;;  %s1345_s29 = scalar_lea.vmem %s1021_s28, 256  ;;  %p1350_p1 = scmp.lt.s32.totalorder %s1021_s28, %s1021_s28 }
  0x43   :  { %v1284_v5 = vld [vmem:[%s1725_s3 + $0x80] sm:$0xff]   ;;  %1158 = vmatprep.subr.bf16.mxu1 %v1282_v3  ;;  %1137 = vmatpush3.bf16.msra.mxu0 %v1283_v4  ;;  %v1288_v9 = vld [vmem:[%s1725_s3 + $0x88] sm:$0xff]   ;;  %v1291_v12 = vld [vmem:[%s1725_s3 + $0x10] sm:$0xff]   ;;  %p1346_p0 = scmp.ne.s32.totalorder %s1021_s28, %s1345_s29  ;;  %p1351_p2 = scmp.lt.s32.totalorder %s1345_s29, %s1345_s29 }
  0x44   :  { %1159 = vmatpush3.bf16.msra.mxu1 %v1284_v5  ;;  %1138 = vmatprep.subr.bf16.mxu0 %v1285_v6  ;;  %v1292_v13 = vld [vmem:[%s1725_s3 + $0x90] sm:$0xff]   ;;  %v1293_v14 = vld [vmem:[%s1725_s3 + $0x58] sm:$0xff]   ;;  %v1297_v18 = vld [vmem:[%s1725_s3 + $0x60] sm:$0xff]  }
  0x45   :  { %1160 = vmatprep.subr.bf16.mxu1 %v1286_v7  ;;  %v1294_v15 = vld [vmem:[%s1725_s3 + $0xd8] sm:$0xff]   ;;  %v1298_v19 = vld [vmem:[%s1725_s3 + $0xe0] sm:$0xff]   ;;  %v1301_v22 = vld [vmem:[%s1725_s3 + $0x68] sm:$0xff]   ;;  %p1352_p3 = por %p1351_p2, %p1350_p1 }
  0x46   :  { %v1295_v16 = vld [vmem:[%s1725_s3 + $0x18] sm:$0xff]   ;;  %v1299_v20 = vld [vmem:[%s1725_s3 + $0x20] sm:$0xff]   ;;  %v1302_v23 = vld [vmem:[%s1725_s3 + $0xe8] sm:$0xff]  }
  0x47   :  { %1139 = vmatpush3.bf16.msra.mxu0 %v1287_v8  ;;  %v1296_v17 = vld [vmem:[%s1725_s3 + $0x98] sm:$0xff]   ;;  %v1300_v21 = vld [vmem:[%s1725_s3 + $0xa0] sm:$0xff]   ;;  %v1303_v24 = vld [vmem:[%s1725_s3 + $0x28] sm:$0xff]   ;;  %p1353_p4 = pnand %p1352_p3, %p1346_p0 }
  0x48   :  { %1161 = vmatpush3.bf16.msra.mxu1 %v1288_v9  ;;  %1140 = vmatprep.subr.bf16.mxu0 %v1289_v10  ;;  %v1304_v25 = vld [vmem:[%s1725_s3 + $0xa8] sm:$0xff]   ;;  %v1305_v26 = vld [vmem:[%s1725_s3 + $0x70] sm:$0xff]   ;;  %v1309_v30 = vld [vmem:[%s1725_s3 + $0x78] sm:$0xff]  }
  0x49   :  { %1162 = vmatprep.subr.bf16.mxu1 %v1290_v11  ;;  %v1306_v27 = vld [vmem:[%s1725_s3 + $0xf0] sm:$0xff]   ;;  %v1310_v31 = vld [vmem:[%s1725_s3 + $0xf8] sm:$0xff]  }
  0x4a   :  { %v1307_v28 = vld [vmem:[%s1725_s3 + $0x30] sm:$0xff]   ;;  %v1311_v32 = vld [vmem:[%s1725_s3 + $0x38] sm:$0xff]  }
  0x4b   :  { %1141 = vmatpush3.bf16.msra.mxu0 %v1291_v12  ;;  %v1308_v29 = vld [vmem:[%s1725_s3 + $0xb0] sm:$0xff]   ;;  %v1312_v33 = vld [vmem:[%s1725_s3 + $0xb8] sm:$0xff]  }
  0x4c   :  { %1163 = vmatpush3.bf16.msra.mxu1 %v1292_v13  ;;  %1142 = vmatprep.subr.bf16.mxu0 %v1293_v14 }
  0x4d   :  { %1164 = vmatprep.subr.bf16.mxu1 %v1294_v15 }
  0x4f   :  { %1143 = vmatpush3.bf16.msra.mxu0 %v1295_v16 }
  0x50   :  { %1165 = vmatpush3.bf16.msra.mxu1 %v1296_v17  ;;  %1144 = vmatprep.subr.bf16.mxu0 %v1297_v18 }
  0x51   :  { %1166 = vmatprep.subr.bf16.mxu1 %v1298_v19 }
  0x53   :  { %1145 = vmatpush3.bf16.msra.mxu0 %v1299_v20 }
  0x54   :  { %1167 = vmatpush3.bf16.msra.mxu1 %v1300_v21  ;;  %1146 = vmatprep.subr.bf16.mxu0 %v1301_v22 }
  0x55   :  { %1168 = vmatprep.subr.bf16.mxu1 %v1302_v23 }
  0x57   :  { %1147 = vmatpush3.bf16.msra.mxu0 %v1303_v24 }
  0x58   :  { %1169 = vmatpush3.bf16.msra.mxu1 %v1304_v25  ;;  %1148 = vmatprep.subr.bf16.mxu0 %v1305_v26 }
  0x59   :  { %1170 = vmatprep.subr.bf16.mxu1 %v1306_v27 }
  0x5b   :  { %1149 = vmatpush3.bf16.msra.mxu0 %v1307_v28 }
  0x5c   :  { %1171 = vmatpush3.bf16.msra.mxu1 %v1308_v29  ;;  %1150 = vmatprep.subr.bf16.mxu0 %v1309_v30 }
  0x5d   :  { %1172 = vmatprep.subr.bf16.mxu1 %v1310_v31 }
  0x5f   :  { %1151 = vmatpush3.bf16.msra.mxu0 %v1311_v32 }
  0x60   :  { %1173 = vmatpush3.bf16.msra.mxu1 %v1312_v33 }
  0xf5   :  { %v262_v34 = vpop.f32.mrb[0].mxu0  ;;  %v305_v35 = vpop.f32.mrb[0].mxu1 }
  0xf6   :  { %v1096_v36 = vmul.f32 -1.442695, %v262_v34  ;;  %v1098_v37 = vmul.f32 -1.442695, %v305_v35  ;;  %v264_v38 = vpop.f32.mrb[1].mxu0  ;;  %v307_v39 = vpop.f32.mrb[1].mxu1 }
  0xf7   :  { %v1097_v40 = vmul.f32 -1.442695, %v264_v38  ;;  %v1099_v41 = vmul.f32 -1.442695, %v307_v39  ;;  %v266_v42 = vpop.f32.mrb[2].mxu0  ;;  %v309_v43 = vpop.f32.mrb[2].mxu1 }
  0xf8   :  { %1313 = vpow2.f32 %v1096_v36  ;;  %v1100_v44 = vmul.f32 -1.442695, %v266_v42  ;;  %v268_v45 = vpop.f32.mrb[3].mxu0  ;;  %v311_v46 = vpop.f32.mrb[3].mxu1  ;;  %v1102_v47 = vmul.f32 -1.442695, %v309_v43 }
  0xf9   :  { %1315 = vpow2.f32 %v1098_v37  ;;  %v1101_v48 = vmul.f32 -1.442695, %v268_v45  ;;  %v1103_v49 = vmul.f32 -1.442695, %v311_v46 }
  0xfa   :  { %1317 = vpow2.f32 %v1097_v40 }
  0xfb   :  { %1319 = vpow2.f32 %v1099_v41 }
  0xfc   :  { %1321 = vpow2.f32 %v1100_v44 }
  0xfd   :  { %1323 = vpow2.f32 %v1102_v47 }
  0xfe   :  { %1325 = vpow2.f32 %v1101_v48 }
  0xff   :  { %1327 = vpow2.f32 %v1103_v49 }
 0x102   :  { %v1314_v50 = vpop.eup %1313 }
 0x103   :  { %v1316_v51 = vpop.eup %1315  ;;  %v616_v52 = vadd.f32 1.0, %v1314_v50 }
 0x104   :  { %v1318_v53 = vpop.eup %1317  ;;  %v618_v54 = vadd.f32 1.0, %v1316_v51 }
 0x105   :  { %v1320_v55 = vpop.eup %1319  ;;  %1329 = vrcp.f32 %v616_v52  ;;  %v617_v56 = vadd.f32 1.0, %v1318_v53  ;;  %v1010_v52 = vld [vmem:[%s1726_s4 + $0x8] sm:$0xff] }
 0x106   :  { %v1322_v57 = vpop.eup %1321  ;;  %1331 = vrcp.f32 %v618_v54  ;;  %v619_v58 = vadd.f32 1.0, %v1320_v55 }
 0x107   :  { %v1324_v59 = vpop.eup %1323  ;;  %1333 = vrcp.f32 %v617_v56  ;;  %v620_v60 = vadd.f32 1.0, %v1322_v57 }
 0x108   :  { %v1326_v61 = vpop.eup %1325  ;;  %1335 = vrcp.f32 %v619_v58  ;;  %v622_v62 = vadd.f32 1.0, %v1324_v59 }
 0x109   :  { %v1328_v63 = vpop.eup %1327  ;;  %1337 = vrcp.f32 %v620_v60  ;;  %v621_v0 = vadd.f32 1.0, %v1326_v61 }
 0x10a   :  { %1339 = vrcp.f32 %v622_v62  ;;  %v623_v1 = vadd.f32 1.0, %v1328_v63 }
 0x10b   :  { %1341 = vrcp.f32 %v621_v0 }
 0x10c   :  { %1343 = vrcp.f32 %v623_v1 }
 0x10f   :  { %v1330_v2 = vpop.eup %1329 }
 0x110   :  { %v1332_v3 = vpop.eup %1331  ;;  %v640_v8 = vmul.f32 %v1330_v2, %v262_v34 }
 0x111   :  { %v1334_v4 = vpop.eup %1333  ;;  %v642_v9 = vmul.f32 %v1332_v3, %v305_v35 }
 0x112   :  { %v1336_v5 = vpop.eup %1335  ;;  %v641_v11 = vmul.f32 %v1334_v4, %v264_v38 }
 0x113   :  { %v1338_v6 = vpop.eup %1337  ;;  %v643_v12 = vmul.f32 %v1336_v5, %v307_v39 }
 0x114   :  { %v1340_v7 = vpop.eup %1339  ;;  %v644_v16 = vmul.f32 %v1338_v6, %v266_v42 }
 0x115   :  { %v1342_v10 = vpop.eup %1341  ;;  %v540_v13 = vpop.f32.mrb[4].mxu0  ;;  %v646_v17 = vmul.f32 %v1340_v7, %v309_v43 }
 0x116   :  { %v583_v14 = vpop.f32.mrb[4].mxu1  ;;  %v1344_v15 = vpop.eup %1343  ;;  %v648_v18 = vmul.f32 %v640_v8, %v540_v13  ;;  %v645_v22 = vmul.f32 %v1342_v10, %v268_v45 }
 0x117   :  { %v650_v19 = vmul.f32 %v642_v9, %v583_v14  ;;  %v542_v20 = vpop.f32.mrb[5].mxu0  ;;  %v585_v21 = vpop.f32.mrb[5].mxu1  ;;  %v647_v23 = vmul.f32 %v1344_v15, %v311_v46  ;;  %v1009_v46 = vld [vmem:[%s1726_s4] sm:$0xff] }
 0x118   :  { %v649_v24 = vmul.f32 %v641_v11, %v542_v20  ;;  %v651_v25 = vmul.f32 %v643_v12, %v585_v21  ;;  %v544_v26 = vpop.f32.mrb[6].mxu0  ;;  %v587_v27 = vpop.f32.mrb[6].mxu1 }
 0x119   :  { %v652_v28 = vmul.f32 %v644_v16, %v544_v26  ;;  %v654_v29 = vmul.f32 %v646_v17, %v587_v27  ;;  %v546_v30 = vpop.f32.mrb[7].mxu0  ;;  %v589_v31 = vpop.f32.mrb[7].mxu1 }
 0x11a   :  { %v653_v32 = vmul.f32 %v645_v22, %v546_v30  ;;  %v655_v33 = vmul.f32 %v647_v23, %v589_v31 }
 0x11b   :  { %v658_v34 = vpack.c.bf16 %v652_v28, %v648_v18  ;;  %v660_v35 = vpack.c.bf16 %v654_v29, %v650_v19 }
 0x11c   :  { %v659_v36 = vpack.c.bf16 %v653_v32, %v649_v24  ;;  %v661_v37 = vpack.c.bf16 %v655_v33, %v651_v25 }
 0x11e   :  { %950 = vmatprep.mubr.bf16.mxu0 %v659_v36  ;;  %991 = vmatprep.mubr.bf16.mxu1 %v661_v37 }
 0x11f   :  { %951 = vmatmul.mubr.bf16.vlgmr.msra.gmra.mrb[8].mxu0 %v658_v34  ;;  %992 = vmatmul.mubr.bf16.vlgmr.msra.gmra.mrb[8].mxu1 %v660_v35 }
 0x1f2   :  { %v1152_v38 = vpop.f32.mrb[8].mxu0  ;;  %v1174_v39 = vpop.f32.mrb[8].mxu1 }
 0x1f3   :  { %v1153_v40 = vpop.f32.mrb[9].mxu0  ;;  %v1175_v41 = vpop.f32.mrb[9].mxu1 }
 0x1f4   :  { %v1154_v42 = vadd.f32 %v1153_v40, %v1152_v38  ;;  %v1176_v43 = vadd.f32 %v1175_v41, %v1174_v39  ;;  %v1155_v44 = vpop.f32.mrb[10].mxu0  ;;  %v1177_v45 = vpop.f32.mrb[10].mxu1 }
 0x1f5   :  { %v1156_v47 = vpop.f32.mrb[11].mxu0  ;;  %v1178_v48 = vpop.f32.mrb[11].mxu1 }
 0x1f6   :  { %v994_v49 = vadd.f32 %v1176_v43, %v1154_v42  ;;  %v1157_v50 = vadd.f32 %v1156_v47, %v1155_v44  ;;  %v1179_v51 = vadd.f32 %v1178_v48, %v1177_v45 }
 0x1f8   :  { %v1011_v53 = vadd.f32 %v1009_v46, %v994_v49  ;;  %v997_v54 = vadd.f32 %v1179_v51, %v1157_v50 }
 0x1fa   :  { %1013 = vst [vmem:[#allocation3] sm:$0xff] %v1011_v53  ;;  %v1012_v55 = vadd.f32 %v1010_v52, %v997_v54 }
 0x1fc   :  { %1014 = vst [vmem:[#allocation3 + $0x8] sm:$0xff] %v1012_v55 }
 0x1fd   :  { %1356 = shalt.err (!%p1353_p4)
}
 0x1fe   :  { %s1357_s7 = scalar_lea.hbm %s1727_s5, 256 }
 0x1ff   :  { %p1358_p5 = scmp.ne.s32.totalorder %s1727_s5, %s1357_s7  ;;  %p1361_p6 = scmp.lt.u32.totalorder %s1357_s7, %s1727_s5 }
 0x201   :  { %p1363_p7 = pnand %p1361_p6, %p1358_p5 }
 0x203   :  { %1366 = shalt.err (!%p1363_p7)
}
 0x204   :  { %s1371_s11 = smov 128   ;;  %s1372_s12 = smov 8  }
 0x205   :  { %1026 = dma.vmem_to_hbm [thread:$0]  %s1021_s28, 256, %s1727_s5, [#allocation4], %s1371_s11, %s1371_s11, %s1372_s12  }
 0x206   :  { %1367 = dma.done.wait [#allocation4], 256  }
 0x207   :  { %1368 = vsyncadd [#allocation4], 4294967040 }
 0x208   :  { %1030 = vsyncpa [#allocation4], 1 }

</bundles_post_ra>
